<compile_context>
chip_gen: v5e
topology: v5e:2x2
jax: 0.10.0
libtpu: 0.0.40
codegen_flags: <defaults>
</compile_context>

<pallas_src>
import functools

import jax
import jax.numpy as jnp
from jax import lax
from jax.experimental import pallas as pl
from jax.experimental.pallas import tpu as pltpu

NEG_BIG = -1e30  # bias for padded output lanes -> exp underflows to exactly 0


# ----------------------------------------------------------------------------
# Pallas kernel: packed input-gate precompute + GRU recurrence + FC + softmax.
# Gate lane layout inside the packed (.., Gp=128) tensors: [r | z | n | pad].
# ----------------------------------------------------------------------------
def gru_fc_softmax_kernel(emb_ref,                 # (S*Bp, H)  time-major embedded inputs
                          wih_ref,                 # (H, Gp)    packed input->hidden weights
                          bx_ref,                  # (1, Gp)    packed input-side bias (r/z: b_ih+b_hh, n: b_in)
                          whh_ref,                 # (H, Gp)    packed hidden->hidden weights
                          bh_ref,                  # (1, Gp)    packed hidden-side bias (only n lanes: b_hn)
                          wfc_ref,                 # (H, Opad)  fc weight (transposed, lane-padded)
                          bfc_ref,                 # (1, Opad)  fc bias   (pad lanes = -1e30)
                          out_ref,                 # (S*Bp, Opad) softmax probabilities
                          gx_ref,                  # (S*Bp, Gp) scratch: precomputed input gates
                          hs_ref,                  # (S*Bp, H)  scratch: hidden states, all steps
                          *, seq_len, bp, hidden):
    H = hidden
    Gp = gx_ref.shape[1]

    # ---- Phase 1: ONE packed input-side gate matmul for ALL timesteps. -----
    gx_ref[...] = jnp.dot(emb_ref[...], wih_ref[...],
                          preferred_element_type=jnp.float32) + bx_ref[...]

    # ---- Phase 2: recurrence — one packed h @ Whh per step. ----------------
    whh = whh_ref[...]
    bh = jnp.broadcast_to(bh_ref[...], (bp, Gp))      # broadcast hoisted out of loop
    h = jnp.zeros((bp, H), jnp.float32)               # h_0 = 0 (PyTorch default)

    # TODO(synk): switch to lax.fori_loop(..., unroll=k) for large S to bound
    # vreg live ranges; at S=8 the full static unroll is optimal.
    for t in range(seq_len):                          # fully unrolled, static slices
        r0 = t * bp
        gx = gx_ref[r0:r0 + bp, :]                    # (bp, Gp)
        gh = jnp.dot(h, whh, preferred_element_type=jnp.float32) + bh
        rz = jax.nn.sigmoid(gx + gh)                  # r/z lanes valid; n lanes unused
        r = rz[:, 0:H]
        z = rz[:, H:2 * H]
        n = jnp.tanh(gx[:, 2 * H:3 * H] + r * gh[:, 2 * H:3 * H])
        h = (1.0 - z) * n + z * h
        hs_ref[r0:r0 + bp, :] = h

    # ---- Phase 3: FC + softmax for all timesteps in one shot. --------------
    logits = jnp.dot(hs_ref[...], wfc_ref[...],
                     preferred_element_type=jnp.float32) + bfc_ref[...]  # (S*Bp, Opad)
    m = jnp.max(logits, axis=-1, keepdims=True)
    e = jnp.exp(logits - m)                           # padded lanes -> exactly 0
    denom = jnp.sum(e, axis=-1, keepdims=True)
    # Exact normalization (approx reciprocal violated the row-sum tolerance).
    out_ref[...] = e / denom


# ----------------------------------------------------------------------------
# Wrapper: embedding lookup (glue), packed layout prep + pallas_call.
# ----------------------------------------------------------------------------
@jax.jit
def sequence_model_forward(x_tokens, params):
    emb_table = params["embedding"]          # (V, H)
    w_ih = params["w_ih"]                    # (3H, H)  torch layout [r|z|n]
    w_hh = params["w_hh"]                    # (3H, H)
    b_ih = params["b_ih"]                    # (3H,)
    b_hh = params["b_hh"]                    # (3H,)
    w_fc = params["w_fc"]                    # (O, H)
    b_fc = params["b_fc"]                    # (O,)

    B, S = x_tokens.shape
    H = emb_table.shape[1]
    O = w_fc.shape[0]
    Bp = ((B + 7) // 8) * 8                  # pad batch to 8-sublane tile
    Gp = ((3 * H + 127) // 128) * 128        # packed gate lanes (128 for H=32)
    Opad = ((O + 127) // 128) * 128          # lane-dense output

    # Time-major embedding gather on the padded *token* array (avoids the
    # (B,S,H) activation transpose + pad copies of the previous version).
    # TODO(synk): at production S/B, fold the gather into the kernel via
    # PrefetchScalarGridSpec + pl.Element row gather.
    tok = jnp.pad(x_tokens.T, ((0, 0), (0, Bp - B)))                 # (S, Bp), pad id = 0
    emb2d = jnp.take(emb_table, tok, axis=0).astype(jnp.float32)     # (S, Bp, H)
    emb2d = emb2d.reshape(S * Bp, H)                                 # (S*Bp, H)

    # Packed, transposed GRU weights: columns [W_*r^T | W_*z^T | W_*n^T | 0].
    # TODO(synk): cast matmul operands to bf16 (keep f32 accumulate) at
    # production H; at H=32 default-precision f32 dots are already MXU-cheap.
    wih_packed = jnp.pad(w_ih.T.astype(jnp.float32), ((0, 0), (0, Gp - 3 * H)))
    whh_packed = jnp.pad(w_hh.T.astype(jnp.float32), ((0, 0), (0, Gp - 3 * H)))
    # r/z: b_ih + b_hh folded into gx; n: only b_in on the input side.
    bx = jnp.concatenate([b_ih[:2 * H] + b_hh[:2 * H], b_ih[2 * H:3 * H]])
    bx_packed = jnp.pad(bx.astype(jnp.float32), (0, Gp - 3 * H)).reshape(1, Gp)
    # Hidden-side bias: only b_hn (stays inside r * (h@W_hn + b_hn)).
    bh = jnp.concatenate([jnp.zeros((2 * H,), jnp.float32),
                          b_hh[2 * H:3 * H].astype(jnp.float32)])
    bh_packed = jnp.pad(bh, (0, Gp - 3 * H)).reshape(1, Gp)

    # FC weights lane-padded; padded logit lanes biased to -1e30 (exp -> 0).
    wfc_pad = jnp.pad(w_fc.T.astype(jnp.float32), ((0, 0), (0, Opad - O)))
    bfc_pad = jnp.concatenate(
        [b_fc.astype(jnp.float32),
         jnp.full((Opad - O,), NEG_BIG, jnp.float32)]).reshape(1, Opad)

    kernel = functools.partial(gru_fc_softmax_kernel, seq_len=S, bp=Bp, hidden=H)

    # Single-invocation grid: all operands/scratch fit easily in VMEM at these
    # shapes (~100 KiB total).  For large S, tile phases 1/3 over a sequence
    # grid axis and add a "parallel" batch axis for the second TC on v7x.
    out2d = pl.pallas_call(
        kernel,
        out_shape=jax.ShapeDtypeStruct((S * Bp, Opad), jnp.float32),
        grid=(1,),
        in_specs=[
            pl.BlockSpec((S * Bp, H), lambda i: (0, 0)),   # emb2d
            pl.BlockSpec((H, Gp), lambda i: (0, 0)),       # wih_packed
            pl.BlockSpec((1, Gp), lambda i: (0, 0)),       # bx_packed
            pl.BlockSpec((H, Gp), lambda i: (0, 0)),       # whh_packed
            pl.BlockSpec((1, Gp), lambda i: (0, 0)),       # bh_packed
            pl.BlockSpec((H, Opad), lambda i: (0, 0)),     # wfc_pad
            pl.BlockSpec((1, Opad), lambda i: (0, 0)),     # bfc_pad
        ],
        out_specs=pl.BlockSpec((S * Bp, Opad), lambda i: (0, 0)),
        scratch_shapes=[
            pltpu.VMEM((S * Bp, Gp), jnp.float32),   # gx (packed gates, all steps)
            pltpu.VMEM((S * Bp, H), jnp.float32),    # hs (hidden states, all steps)
        ],
        compiler_params=pltpu.CompilerParams(
            dimension_semantics=("arbitrary",)),
    )(emb2d, wih_packed, bx_packed, whh_packed, bh_packed, wfc_pad, bfc_pad)

    out = out2d.reshape(S, Bp, Opad)[:, :B, :O]             # drop batch/lane padding
    return jnp.transpose(out, (1, 0, 2))                    # (B, S, O) batch_first


# ----------------------------------------------------------------------------
# Pure-JAX reference (same math) for a correctness sanity check.
# ----------------------------------------------------------------------------
def sequence_model_ref(x_tokens, params):
    emb = jnp.take(params["embedding"], x_tokens, axis=0)   # (B, S, H)
    H = emb.shape[-1]
    w_ih_t = params["w_ih"].T
    w_hh_t = params["w_hh"].T
    b_ih = params["b_ih"]
    b_hh = params["b_hh"]

    def step(h, x_t):
        gx = x_t @ w_ih_t + b_ih
        gh = h @ w_hh_t + b_hh
        r = jax.nn.sigmoid(gx[:, :H] + gh[:, :H])
        z = jax.nn.sigmoid(gx[:, H:2 * H] + gh[:, H:2 * H])
        n = jnp.tanh(gx[:, 2 * H:] + r * gh[:, 2 * H:])
        h_new = (1.0 - z) * n + z * h
        return h_new, h_new

    B = emb.shape[0]
    h0 = jnp.zeros((B, H), jnp.float32)
    _, hs = lax.scan(step, h0, jnp.transpose(emb, (1, 0, 2)))   # (S, B, H)
    hs = jnp.transpose(hs, (1, 0, 2))                            # (B, S, H)
    logits = hs @ params["w_fc"].T + params["b_fc"]
    return jax.nn.softmax(logits, axis=2)


# ----------------------------------------------------------------------------
# Deterministic parameter construction + demo.
# ----------------------------------------------------------------------------
def make_params(key, vocab, hidden, out):
    ks = jax.random.split(key, 7)
    bound = 1.0 / jnp.sqrt(hidden)
    return {
        "embedding": jax.random.normal(ks[0], (vocab, hidden), jnp.float32),
        "w_ih": jax.random.uniform(ks[1], (3 * hidden, hidden), jnp.float32, -bound, bound),
        "w_hh": jax.random.uniform(ks[2], (3 * hidden, hidden), jnp.float32, -bound, bound),
        "b_ih": jax.random.uniform(ks[3], (3 * hidden,), jnp.float32, -bound, bound),
        "b_hh": jax.random.uniform(ks[4], (3 * hidden,), jnp.float32, -bound, bound),
        "w_fc": jax.random.uniform(ks[5], (out, hidden), jnp.float32, -bound, bound),
        "b_fc": jax.random.uniform(ks[6], (out,), jnp.float32, -bound, bound),
    }


if __name__ == "__main__":
    INPUT_SIZE = 16    # vocab size
    HIDDEN_SIZE = 32
    OUTPUT_SIZE = 8
    BATCH = 2
    SEQ = 8

    key = jax.random.PRNGKey(0)
    pkey, xkey = jax.random.split(key)
    params = make_params(pkey, INPUT_SIZE, HIDDEN_SIZE, OUTPUT_SIZE)
    x = jax.random.randint(xkey, (BATCH, SEQ), 0, INPUT_SIZE, dtype=jnp.int32)

    out = jax.block_until_ready(sequence_model_forward(x, params))
    ref = sequence_model_ref(x, params)

    assert out.shape == (BATCH, SEQ, OUTPUT_SIZE)
    assert jnp.allclose(out, ref, atol=2e-3, rtol=2e-3), "mismatch vs JAX reference"
    # Exact softmax normalization -> rows sum to 1 within float32 rounding.
    assert jnp.allclose(jnp.sum(out, axis=2), 1.0, atol=1e-3), "softmax rows must sum to 1"

    print("KERNEL_OK")
</pallas_src>

<mosaic_0001>
module attributes {stable_mosaic.version = 11 : i64} {
  func.func @gru_fc_softmax_kernel(%arg0: i32, %arg1: memref<64x32xf32, #tpu.memory_space<vmem>>, %arg2: memref<32x128xf32, #tpu.memory_space<vmem>>, %arg3: memref<1x128xf32, #tpu.memory_space<vmem>>, %arg4: memref<32x128xf32, #tpu.memory_space<vmem>>, %arg5: memref<1x128xf32, #tpu.memory_space<vmem>>, %arg6: memref<32x128xf32, #tpu.memory_space<vmem>>, %arg7: memref<1x128xf32, #tpu.memory_space<vmem>>, %arg8: memref<64x128xf32, #tpu.memory_space<vmem>>, %arg9: memref<64x128xf32, #tpu.memory_space<vmem>>, %arg10: memref<64x32xf32, #tpu.memory_space<vmem>>) attributes {dimension_semantics = [#tpu.dimension_semantics<arbitrary>], iteration_bounds = array<i64: 1>, scalar_prefetch = 0 : i64, scratch_operands = 2 : i64, tpu.core_type = #tpu.core_type<tc>, window_params = [{pipeline_mode = #tpu.pipeline_mode<synchronous>, transform_indices = @transform_0, window_bounds = array<i64: 64, 32>}, {pipeline_mode = #tpu.pipeline_mode<synchronous>, transform_indices = @transform_1, window_bounds = array<i64: 32, 128>}, {pipeline_mode = #tpu.pipeline_mode<synchronous>, transform_indices = @transform_2, window_bounds = array<i64: 1, 128>}, {pipeline_mode = #tpu.pipeline_mode<synchronous>, transform_indices = @transform_3, window_bounds = array<i64: 32, 128>}, {pipeline_mode = #tpu.pipeline_mode<synchronous>, transform_indices = @transform_4, window_bounds = array<i64: 1, 128>}, {pipeline_mode = #tpu.pipeline_mode<synchronous>, transform_indices = @transform_5, window_bounds = array<i64: 32, 128>}, {pipeline_mode = #tpu.pipeline_mode<synchronous>, transform_indices = @transform_6, window_bounds = array<i64: 1, 128>}, {pipeline_mode = #tpu.pipeline_mode<synchronous>, transform_indices = @transform_7, window_bounds = array<i64: 64, 128>}]} {
    %c0 = arith.constant 0 : index
    %c0_0 = arith.constant 0 : index
    %0 = vector.load %arg1[%c0, %c0_0] : memref<64x32xf32, #tpu.memory_space<vmem>>, vector<64x32xf32>
    %c0_1 = arith.constant 0 : index
    %c0_2 = arith.constant 0 : index
    %1 = vector.load %arg2[%c0_1, %c0_2] : memref<32x128xf32, #tpu.memory_space<vmem>>, vector<32x128xf32>
    %cst = arith.constant dense<0.000000e+00> : vector<64x128xf32>
    %2 = tpu.matmul %0, %1, %cst {dimension_numbers = #tpu.dot_dimension_numbers<[1], [0], [0], [1], [0, 0, 1, 1], [], []>} : vector<64x32xf32>, vector<32x128xf32>, vector<64x128xf32> -> vector<64x128xf32>
    %c0_3 = arith.constant 0 : index
    %c0_4 = arith.constant 0 : index
    %3 = vector.load %arg3[%c0_3, %c0_4] : memref<1x128xf32, #tpu.memory_space<vmem>>, vector<1x128xf32>
    %4 = vector.broadcast %3 : vector<1x128xf32> to vector<64x128xf32>
    %5 = arith.addf %2, %4 : vector<64x128xf32>
    %c0_5 = arith.constant 0 : index
    %c0_6 = arith.constant 0 : index
    %6 = vector.load %arg9[%c0_5, %c0_6] : memref<64x128xf32, #tpu.memory_space<vmem>>, vector<64x128xf32>
    tpu.vector_store %arg9[%c0_5, %c0_6], %5 {strides = array<i32>} : memref<64x128xf32, #tpu.memory_space<vmem>>, vector<64x128xf32>,
    %c0_7 = arith.constant 0 : index
    %c0_8 = arith.constant 0 : index
    %7 = vector.load %arg4[%c0_7, %c0_8] : memref<32x128xf32, #tpu.memory_space<vmem>>, vector<32x128xf32>
    %c0_9 = arith.constant 0 : index
    %c0_10 = arith.constant 0 : index
    %8 = vector.load %arg5[%c0_9, %c0_10] : memref<1x128xf32, #tpu.memory_space<vmem>>, vector<1x128xf32>
    %9 = vector.shape_cast %8 : vector<1x128xf32> to vector<1x128xf32>
    %10 = vector.broadcast %9 : vector<1x128xf32> to vector<8x128xf32>
    %cst_11 = arith.constant 0.000000e+00 : f32
    %11 = vector.broadcast %cst_11 : f32 to vector<8x32xf32>
    %c0_12 = arith.constant 0 : index
    %c0_13 = arith.constant 0 : index
    %12 = vector.load %arg9[%c0_12, %c0_13] : memref<64x128xf32, #tpu.memory_space<vmem>>, vector<8x128xf32>
    %cst_14 = arith.constant dense<0.000000e+00> : vector<8x128xf32>
    %13 = tpu.matmul %11, %7, %cst_14 {dimension_numbers = #tpu.dot_dimension_numbers<[1], [0], [0], [1], [0, 0, 1, 1], [], []>} : vector<8x32xf32>, vector<32x128xf32>, vector<8x128xf32> -> vector<8x128xf32>
    %14 = arith.addf %13, %10 : vector<8x128xf32>
    %15 = arith.addf %12, %14 : vector<8x128xf32>
    %16 = arith.negf %15 : vector<8x128xf32>
    %17 = math.exp %16 : vector<8x128xf32>
    %cst_15 = arith.constant 1.000000e+00 : f32
    %18 = vector.broadcast %cst_15 : f32 to vector<8x128xf32>
    %19 = arith.addf %18, %17 : vector<8x128xf32>
    %20 = arith.divf %18, %19 : vector<8x128xf32>
    %21 = vector.extract_strided_slice %20 {offsets = [0, 0], sizes = [8, 32], strides = [1, 1]} : vector<8x128xf32> to vector<8x32xf32>
    %22 = vector.extract_strided_slice %20 {offsets = [0, 32], sizes = [8, 32], strides = [1, 1]} : vector<8x128xf32> to vector<8x32xf32>
    %23 = vector.extract_strided_slice %12 {offsets = [0, 64], sizes = [8, 32], strides = [1, 1]} : vector<8x128xf32> to vector<8x32xf32>
    %24 = vector.extract_strided_slice %14 {offsets = [0, 64], sizes = [8, 32], strides = [1, 1]} : vector<8x128xf32> to vector<8x32xf32>
    %25 = arith.mulf %21, %24 : vector<8x32xf32>
    %26 = arith.addf %23, %25 : vector<8x32xf32>
    %27 = math.tanh %26 : vector<8x32xf32>
    %cst_16 = arith.constant 1.000000e+00 : f32
    %28 = vector.broadcast %cst_16 : f32 to vector<8x32xf32>
    %29 = arith.subf %28, %22 : vector<8x32xf32>
    %30 = arith.mulf %29, %27 : vector<8x32xf32>
    %31 = arith.mulf %22, %11 : vector<8x32xf32>
    %32 = arith.addf %30, %31 : vector<8x32xf32>
    %c0_17 = arith.constant 0 : index
    %c0_18 = arith.constant 0 : index
    %33 = vector.load %arg10[%c0_17, %c0_18] : memref<64x32xf32, #tpu.memory_space<vmem>>, vector<8x32xf32>
    tpu.vector_store %arg10[%c0_17, %c0_18], %32 {strides = array<i32>} : memref<64x32xf32, #tpu.memory_space<vmem>>, vector<8x32xf32>,
    %c8 = arith.constant 8 : index
    %c0_19 = arith.constant 0 : index
    %34 = vector.load %arg9[%c8, %c0_19] : memref<64x128xf32, #tpu.memory_space<vmem>>, vector<8x128xf32>
    %cst_20 = arith.constant dense<0.000000e+00> : vector<8x128xf32>
    %35 = tpu.matmul %32, %7, %cst_20 {dimension_numbers = #tpu.dot_dimension_numbers<[1], [0], [0], [1], [0, 0, 1, 1], [], []>} : vector<8x32xf32>, vector<32x128xf32>, vector<8x128xf32> -> vector<8x128xf32>
    %36 = arith.addf %35, %10 : vector<8x128xf32>
    %37 = arith.addf %34, %36 : vector<8x128xf32>
    %38 = arith.negf %37 : vector<8x128xf32>
    %39 = math.exp %38 : vector<8x128xf32>
    %cst_21 = arith.constant 1.000000e+00 : f32
    %40 = vector.broadcast %cst_21 : f32 to vector<8x128xf32>
    %41 = arith.addf %40, %39 : vector<8x128xf32>
    %42 = arith.divf %40, %41 : vector<8x128xf32>
    %43 = vector.extract_strided_slice %42 {offsets = [0, 0], sizes = [8, 32], strides = [1, 1]} : vector<8x128xf32> to vector<8x32xf32>
    %44 = vector.extract_strided_slice %42 {offsets = [0, 32], sizes = [8, 32], strides = [1, 1]} : vector<8x128xf32> to vector<8x32xf32>
    %45 = vector.extract_strided_slice %34 {offsets = [0, 64], sizes = [8, 32], strides = [1, 1]} : vector<8x128xf32> to vector<8x32xf32>
    %46 = vector.extract_strided_slice %36 {offsets = [0, 64], sizes = [8, 32], strides = [1, 1]} : vector<8x128xf32> to vector<8x32xf32>
    %47 = arith.mulf %43, %46 : vector<8x32xf32>
    %48 = arith.addf %45, %47 : vector<8x32xf32>
    %49 = math.tanh %48 : vector<8x32xf32>
    %cst_22 = arith.constant 1.000000e+00 : f32
    %50 = vector.broadcast %cst_22 : f32 to vector<8x32xf32>
    %51 = arith.subf %50, %44 : vector<8x32xf32>
    %52 = arith.mulf %51, %49 : vector<8x32xf32>
    %53 = arith.mulf %44, %32 : vector<8x32xf32>
    %54 = arith.addf %52, %53 : vector<8x32xf32>
    %c8_23 = arith.constant 8 : index
    %c0_24 = arith.constant 0 : index
    %55 = vector.load %arg10[%c8_23, %c0_24] : memref<64x32xf32, #tpu.memory_space<vmem>>, vector<8x32xf32>
    tpu.vector_store %arg10[%c8_23, %c0_24], %54 {strides = array<i32>} : memref<64x32xf32, #tpu.memory_space<vmem>>, vector<8x32xf32>,
    %c16 = arith.constant 16 : index
    %c0_25 = arith.constant 0 : index
    %56 = vector.load %arg9[%c16, %c0_25] : memref<64x128xf32, #tpu.memory_space<vmem>>, vector<8x128xf32>
    %cst_26 = arith.constant dense<0.000000e+00> : vector<8x128xf32>
    %57 = tpu.matmul %54, %7, %cst_26 {dimension_numbers = #tpu.dot_dimension_numbers<[1], [0], [0], [1], [0, 0, 1, 1], [], []>} : vector<8x32xf32>, vector<32x128xf32>, vector<8x128xf32> -> vector<8x128xf32>
    %58 = arith.addf %57, %10 : vector<8x128xf32>
    %59 = arith.addf %56, %58 : vector<8x128xf32>
    %60 = arith.negf %59 : vector<8x128xf32>
    %61 = math.exp %60 : vector<8x128xf32>
    %cst_27 = arith.constant 1.000000e+00 : f32
    %62 = vector.broadcast %cst_27 : f32 to vector<8x128xf32>
    %63 = arith.addf %62, %61 : vector<8x128xf32>
    %64 = arith.divf %62, %63 : vector<8x128xf32>
    %65 = vector.extract_strided_slice %64 {offsets = [0, 0], sizes = [8, 32], strides = [1, 1]} : vector<8x128xf32> to vector<8x32xf32>
    %66 = vector.extract_strided_slice %64 {offsets = [0, 32], sizes = [8, 32], strides = [1, 1]} : vector<8x128xf32> to vector<8x32xf32>
    %67 = vector.extract_strided_slice %56 {offsets = [0, 64], sizes = [8, 32], strides = [1, 1]} : vector<8x128xf32> to vector<8x32xf32>
    %68 = vector.extract_strided_slice %58 {offsets = [0, 64], sizes = [8, 32], strides = [1, 1]} : vector<8x128xf32> to vector<8x32xf32>
    %69 = arith.mulf %65, %68 : vector<8x32xf32>
    %70 = arith.addf %67, %69 : vector<8x32xf32>
    %71 = math.tanh %70 : vector<8x32xf32>
    %cst_28 = arith.constant 1.000000e+00 : f32
    %72 = vector.broadcast %cst_28 : f32 to vector<8x32xf32>
    %73 = arith.subf %72, %66 : vector<8x32xf32>
    %74 = arith.mulf %73, %71 : vector<8x32xf32>
    %75 = arith.mulf %66, %54 : vector<8x32xf32>
    %76 = arith.addf %74, %75 : vector<8x32xf32>
    %c16_29 = arith.constant 16 : index
    %c0_30 = arith.constant 0 : index
    %77 = vector.load %arg10[%c16_29, %c0_30] : memref<64x32xf32, #tpu.memory_space<vmem>>, vector<8x32xf32>
    tpu.vector_store %arg10[%c16_29, %c0_30], %76 {strides = array<i32>} : memref<64x32xf32, #tpu.memory_space<vmem>>, vector<8x32xf32>,
    %c24 = arith.constant 24 : index
    %c0_31 = arith.constant 0 : index
    %78 = vector.load %arg9[%c24, %c0_31] : memref<64x128xf32, #tpu.memory_space<vmem>>, vector<8x128xf32>
    %cst_32 = arith.constant dense<0.000000e+00> : vector<8x128xf32>
    %79 = tpu.matmul %76, %7, %cst_32 {dimension_numbers = #tpu.dot_dimension_numbers<[1], [0], [0], [1], [0, 0, 1, 1], [], []>} : vector<8x32xf32>, vector<32x128xf32>, vector<8x128xf32> -> vector<8x128xf32>
    %80 = arith.addf %79, %10 : vector<8x128xf32>
    %81 = arith.addf %78, %80 : vector<8x128xf32>
    %82 = arith.negf %81 : vector<8x128xf32>
    %83 = math.exp %82 : vector<8x128xf32>
    %cst_33 = arith.constant 1.000000e+00 : f32
    %84 = vector.broadcast %cst_33 : f32 to vector<8x128xf32>
    %85 = arith.addf %84, %83 : vector<8x128xf32>
    %86 = arith.divf %84, %85 : vector<8x128xf32>
    %87 = vector.extract_strided_slice %86 {offsets = [0, 0], sizes = [8, 32], strides = [1, 1]} : vector<8x128xf32> to vector<8x32xf32>
    %88 = vector.extract_strided_slice %86 {offsets = [0, 32], sizes = [8, 32], strides = [1, 1]} : vector<8x128xf32> to vector<8x32xf32>
    %89 = vector.extract_strided_slice %78 {offsets = [0, 64], sizes = [8, 32], strides = [1, 1]} : vector<8x128xf32> to vector<8x32xf32>
    %90 = vector.extract_strided_slice %80 {offsets = [0, 64], sizes = [8, 32], strides = [1, 1]} : vector<8x128xf32> to vector<8x32xf32>
    %91 = arith.mulf %87, %90 : vector<8x32xf32>
    %92 = arith.addf %89, %91 : vector<8x32xf32>
    %93 = math.tanh %92 : vector<8x32xf32>
    %cst_34 = arith.constant 1.000000e+00 : f32
    %94 = vector.broadcast %cst_34 : f32 to vector<8x32xf32>
    %95 = arith.subf %94, %88 : vector<8x32xf32>
    %96 = arith.mulf %95, %93 : vector<8x32xf32>
    %97 = arith.mulf %88, %76 : vector<8x32xf32>
    %98 = arith.addf %96, %97 : vector<8x32xf32>
    %c24_35 = arith.constant 24 : index
    %c0_36 = arith.constant 0 : index
    %99 = vector.load %arg10[%c24_35, %c0_36] : memref<64x32xf32, #tpu.memory_space<vmem>>, vector<8x32xf32>
    tpu.vector_store %arg10[%c24_35, %c0_36], %98 {strides = array<i32>} : memref<64x32xf32, #tpu.memory_space<vmem>>, vector<8x32xf32>,
    %c32 = arith.constant 32 : index
    %c0_37 = arith.constant 0 : index
    %100 = vector.load %arg9[%c32, %c0_37] : memref<64x128xf32, #tpu.memory_space<vmem>>, vector<8x128xf32>
    %cst_38 = arith.constant dense<0.000000e+00> : vector<8x128xf32>
    %101 = tpu.matmul %98, %7, %cst_38 {dimension_numbers = #tpu.dot_dimension_numbers<[1], [0], [0], [1], [0, 0, 1, 1], [], []>} : vector<8x32xf32>, vector<32x128xf32>, vector<8x128xf32> -> vector<8x128xf32>
    %102 = arith.addf %101, %10 : vector<8x128xf32>
    %103 = arith.addf %100, %102 : vector<8x128xf32>
    %104 = arith.negf %103 : vector<8x128xf32>
    %105 = math.exp %104 : vector<8x128xf32>
    %cst_39 = arith.constant 1.000000e+00 : f32
    %106 = vector.broadcast %cst_39 : f32 to vector<8x128xf32>
    %107 = arith.addf %106, %105 : vector<8x128xf32>
    %108 = arith.divf %106, %107 : vector<8x128xf32>
    %109 = vector.extract_strided_slice %108 {offsets = [0, 0], sizes = [8, 32], strides = [1, 1]} : vector<8x128xf32> to vector<8x32xf32>
    %110 = vector.extract_strided_slice %108 {offsets = [0, 32], sizes = [8, 32], strides = [1, 1]} : vector<8x128xf32> to vector<8x32xf32>
    %111 = vector.extract_strided_slice %100 {offsets = [0, 64], sizes = [8, 32], strides = [1, 1]} : vector<8x128xf32> to vector<8x32xf32>
    %112 = vector.extract_strided_slice %102 {offsets = [0, 64], sizes = [8, 32], strides = [1, 1]} : vector<8x128xf32> to vector<8x32xf32>
    %113 = arith.mulf %109, %112 : vector<8x32xf32>
    %114 = arith.addf %111, %113 : vector<8x32xf32>
    %115 = math.tanh %114 : vector<8x32xf32>
    %cst_40 = arith.constant 1.000000e+00 : f32
    %116 = vector.broadcast %cst_40 : f32 to vector<8x32xf32>
    %117 = arith.subf %116, %110 : vector<8x32xf32>
    %118 = arith.mulf %117, %115 : vector<8x32xf32>
    %119 = arith.mulf %110, %98 : vector<8x32xf32>
    %120 = arith.addf %118, %119 : vector<8x32xf32>
    %c32_41 = arith.constant 32 : index
    %c0_42 = arith.constant 0 : index
    %121 = vector.load %arg10[%c32_41, %c0_42] : memref<64x32xf32, #tpu.memory_space<vmem>>, vector<8x32xf32>
    tpu.vector_store %arg10[%c32_41, %c0_42], %120 {strides = array<i32>} : memref<64x32xf32, #tpu.memory_space<vmem>>, vector<8x32xf32>,
    %c40 = arith.constant 40 : index
    %c0_43 = arith.constant 0 : index
    %122 = vector.load %arg9[%c40, %c0_43] : memref<64x128xf32, #tpu.memory_space<vmem>>, vector<8x128xf32>
    %cst_44 = arith.constant dense<0.000000e+00> : vector<8x128xf32>
    %123 = tpu.matmul %120, %7, %cst_44 {dimension_numbers = #tpu.dot_dimension_numbers<[1], [0], [0], [1], [0, 0, 1, 1], [], []>} : vector<8x32xf32>, vector<32x128xf32>, vector<8x128xf32> -> vector<8x128xf32>
    %124 = arith.addf %123, %10 : vector<8x128xf32>
    %125 = arith.addf %122, %124 : vector<8x128xf32>
    %126 = arith.negf %125 : vector<8x128xf32>
    %127 = math.exp %126 : vector<8x128xf32>
    %cst_45 = arith.constant 1.000000e+00 : f32
    %128 = vector.broadcast %cst_45 : f32 to vector<8x128xf32>
    %129 = arith.addf %128, %127 : vector<8x128xf32>
    %130 = arith.divf %128, %129 : vector<8x128xf32>
    %131 = vector.extract_strided_slice %130 {offsets = [0, 0], sizes = [8, 32], strides = [1, 1]} : vector<8x128xf32> to vector<8x32xf32>
    %132 = vector.extract_strided_slice %130 {offsets = [0, 32], sizes = [8, 32], strides = [1, 1]} : vector<8x128xf32> to vector<8x32xf32>
    %133 = vector.extract_strided_slice %122 {offsets = [0, 64], sizes = [8, 32], strides = [1, 1]} : vector<8x128xf32> to vector<8x32xf32>
    %134 = vector.extract_strided_slice %124 {offsets = [0, 64], sizes = [8, 32], strides = [1, 1]} : vector<8x128xf32> to vector<8x32xf32>
    %135 = arith.mulf %131, %134 : vector<8x32xf32>
    %136 = arith.addf %133, %135 : vector<8x32xf32>
    %137 = math.tanh %136 : vector<8x32xf32>
    %cst_46 = arith.constant 1.000000e+00 : f32
    %138 = vector.broadcast %cst_46 : f32 to vector<8x32xf32>
    %139 = arith.subf %138, %132 : vector<8x32xf32>
    %140 = arith.mulf %139, %137 : vector<8x32xf32>
    %141 = arith.mulf %132, %120 : vector<8x32xf32>
    %142 = arith.addf %140, %141 : vector<8x32xf32>
    %c40_47 = arith.constant 40 : index
    %c0_48 = arith.constant 0 : index
    %143 = vector.load %arg10[%c40_47, %c0_48] : memref<64x32xf32, #tpu.memory_space<vmem>>, vector<8x32xf32>
    tpu.vector_store %arg10[%c40_47, %c0_48], %142 {strides = array<i32>} : memref<64x32xf32, #tpu.memory_space<vmem>>, vector<8x32xf32>,
    %c48 = arith.constant 48 : index
    %c0_49 = arith.constant 0 : index
    %144 = vector.load %arg9[%c48, %c0_49] : memref<64x128xf32, #tpu.memory_space<vmem>>, vector<8x128xf32>
    %cst_50 = arith.constant dense<0.000000e+00> : vector<8x128xf32>
    %145 = tpu.matmul %142, %7, %cst_50 {dimension_numbers = #tpu.dot_dimension_numbers<[1], [0], [0], [1], [0, 0, 1, 1], [], []>} : vector<8x32xf32>, vector<32x128xf32>, vector<8x128xf32> -> vector<8x128xf32>
    %146 = arith.addf %145, %10 : vector<8x128xf32>
    %147 = arith.addf %144, %146 : vector<8x128xf32>
    %148 = arith.negf %147 : vector<8x128xf32>
    %149 = math.exp %148 : vector<8x128xf32>
    %cst_51 = arith.constant 1.000000e+00 : f32
    %150 = vector.broadcast %cst_51 : f32 to vector<8x128xf32>
    %151 = arith.addf %150, %149 : vector<8x128xf32>
    %152 = arith.divf %150, %151 : vector<8x128xf32>
    %153 = vector.extract_strided_slice %152 {offsets = [0, 0], sizes = [8, 32], strides = [1, 1]} : vector<8x128xf32> to vector<8x32xf32>
    %154 = vector.extract_strided_slice %152 {offsets = [0, 32], sizes = [8, 32], strides = [1, 1]} : vector<8x128xf32> to vector<8x32xf32>
    %155 = vector.extract_strided_slice %144 {offsets = [0, 64], sizes = [8, 32], strides = [1, 1]} : vector<8x128xf32> to vector<8x32xf32>
    %156 = vector.extract_strided_slice %146 {offsets = [0, 64], sizes = [8, 32], strides = [1, 1]} : vector<8x128xf32> to vector<8x32xf32>
    %157 = arith.mulf %153, %156 : vector<8x32xf32>
    %158 = arith.addf %155, %157 : vector<8x32xf32>
    %159 = math.tanh %158 : vector<8x32xf32>
    %cst_52 = arith.constant 1.000000e+00 : f32
    %160 = vector.broadcast %cst_52 : f32 to vector<8x32xf32>
    %161 = arith.subf %160, %154 : vector<8x32xf32>
    %162 = arith.mulf %161, %159 : vector<8x32xf32>
    %163 = arith.mulf %154, %142 : vector<8x32xf32>
    %164 = arith.addf %162, %163 : vector<8x32xf32>
    %c48_53 = arith.constant 48 : index
    %c0_54 = arith.constant 0 : index
    %165 = vector.load %arg10[%c48_53, %c0_54] : memref<64x32xf32, #tpu.memory_space<vmem>>, vector<8x32xf32>
    tpu.vector_store %arg10[%c48_53, %c0_54], %164 {strides = array<i32>} : memref<64x32xf32, #tpu.memory_space<vmem>>, vector<8x32xf32>,
    %c56 = arith.constant 56 : index
    %c0_55 = arith.constant 0 : index
    %166 = vector.load %arg9[%c56, %c0_55] : memref<64x128xf32, #tpu.memory_space<vmem>>, vector<8x128xf32>
    %cst_56 = arith.constant dense<0.000000e+00> : vector<8x128xf32>
    %167 = tpu.matmul %164, %7, %cst_56 {dimension_numbers = #tpu.dot_dimension_numbers<[1], [0], [0], [1], [0, 0, 1, 1], [], []>} : vector<8x32xf32>, vector<32x128xf32>, vector<8x128xf32> -> vector<8x128xf32>
    %168 = arith.addf %167, %10 : vector<8x128xf32>
    %169 = arith.addf %166, %168 : vector<8x128xf32>
    %170 = arith.negf %169 : vector<8x128xf32>
    %171 = math.exp %170 : vector<8x128xf32>
    %cst_57 = arith.constant 1.000000e+00 : f32
    %172 = vector.broadcast %cst_57 : f32 to vector<8x128xf32>
    %173 = arith.addf %172, %171 : vector<8x128xf32>
    %174 = arith.divf %172, %173 : vector<8x128xf32>
    %175 = vector.extract_strided_slice %174 {offsets = [0, 0], sizes = [8, 32], strides = [1, 1]} : vector<8x128xf32> to vector<8x32xf32>
    %176 = vector.extract_strided_slice %174 {offsets = [0, 32], sizes = [8, 32], strides = [1, 1]} : vector<8x128xf32> to vector<8x32xf32>
    %177 = vector.extract_strided_slice %166 {offsets = [0, 64], sizes = [8, 32], strides = [1, 1]} : vector<8x128xf32> to vector<8x32xf32>
    %178 = vector.extract_strided_slice %168 {offsets = [0, 64], sizes = [8, 32], strides = [1, 1]} : vector<8x128xf32> to vector<8x32xf32>
    %179 = arith.mulf %175, %178 : vector<8x32xf32>
    %180 = arith.addf %177, %179 : vector<8x32xf32>
    %181 = math.tanh %180 : vector<8x32xf32>
    %cst_58 = arith.constant 1.000000e+00 : f32
    %182 = vector.broadcast %cst_58 : f32 to vector<8x32xf32>
    %183 = arith.subf %182, %176 : vector<8x32xf32>
    %184 = arith.mulf %183, %181 : vector<8x32xf32>
    %185 = arith.mulf %176, %164 : vector<8x32xf32>
    %186 = arith.addf %184, %185 : vector<8x32xf32>
    %c56_59 = arith.constant 56 : index
    %c0_60 = arith.constant 0 : index
    %187 = vector.load %arg10[%c56_59, %c0_60] : memref<64x32xf32, #tpu.memory_space<vmem>>, vector<8x32xf32>
    tpu.vector_store %arg10[%c56_59, %c0_60], %186 {strides = array<i32>} : memref<64x32xf32, #tpu.memory_space<vmem>>, vector<8x32xf32>,
    %c0_61 = arith.constant 0 : index
    %c0_62 = arith.constant 0 : index
    %188 = vector.load %arg10[%c0_61, %c0_62] : memref<64x32xf32, #tpu.memory_space<vmem>>, vector<64x32xf32>
    %c0_63 = arith.constant 0 : index
    %c0_64 = arith.constant 0 : index
    %189 = vector.load %arg6[%c0_63, %c0_64] : memref<32x128xf32, #tpu.memory_space<vmem>>, vector<32x128xf32>
    %cst_65 = arith.constant dense<0.000000e+00> : vector<64x128xf32>
    %190 = tpu.matmul %188, %189, %cst_65 {dimension_numbers = #tpu.dot_dimension_numbers<[1], [0], [0], [1], [0, 0, 1, 1], [], []>} : vector<64x32xf32>, vector<32x128xf32>, vector<64x128xf32> -> vector<64x128xf32>
    %c0_66 = arith.constant 0 : index
    %c0_67 = arith.constant 0 : index
    %191 = vector.load %arg7[%c0_66, %c0_67] : memref<1x128xf32, #tpu.memory_space<vmem>>, vector<1x128xf32>
    %192 = vector.broadcast %191 : vector<1x128xf32> to vector<64x128xf32>
    %193 = arith.addf %190, %192 : vector<64x128xf32>
    %cst_68 = arith.constant dense<0xFF800000> : vector<64xf32>
    %194 = vector.multi_reduction <maximumf>, %193, %cst_68 [1] : vector<64x128xf32> to vector<64xf32>
    %195 = vector.shape_cast %194 : vector<64xf32> to vector<64x1xf32>
    %196 = vector.broadcast %195 : vector<64x1xf32> to vector<64x128xf32>
    %197 = arith.subf %193, %196 : vector<64x128xf32>
    %198 = math.exp %197 : vector<64x128xf32>
    %cst_69 = arith.constant dense<0.000000e+00> : vector<64xf32>
    %199 = vector.multi_reduction <add>, %198, %cst_69 [1] : vector<64x128xf32> to vector<64xf32>
    %200 = vector.shape_cast %199 : vector<64xf32> to vector<64x1xf32>
    %201 = vector.broadcast %200 : vector<64x1xf32> to vector<64x128xf32>
    %202 = arith.divf %198, %201 : vector<64x128xf32>
    %c0_70 = arith.constant 0 : index
    %c0_71 = arith.constant 0 : index
    %203 = vector.load %arg8[%c0_70, %c0_71] : memref<64x128xf32, #tpu.memory_space<vmem>>, vector<64x128xf32>
    tpu.vector_store %arg8[%c0_70, %c0_71], %202 {strides = array<i32>} : memref<64x128xf32, #tpu.memory_space<vmem>>, vector<64x128xf32>,
    return
  }
  func.func @transform_0(%arg0: i32) -> (i32, i32) {
    %c0_i32 = arith.constant 0 : i32
    %c0_i32_0 = arith.constant 0 : i32
    %c0_i32_1 = arith.constant 0 : i32
    return %c0_i32, %c0_i32_0 : i32, i32
  }
  func.func @transform_1(%arg0: i32) -> (i32, i32) {
    %c0_i32 = arith.constant 0 : i32
    %c0_i32_0 = arith.constant 0 : i32
    %c0_i32_1 = arith.constant 0 : i32
    return %c0_i32, %c0_i32_0 : i32, i32
  }
  func.func @transform_2(%arg0: i32) -> (i32, i32) {
    %c0_i32 = arith.constant 0 : i32
    %c0_i32_0 = arith.constant 0 : i32
    %c0_i32_1 = arith.constant 0 : i32
    return %c0_i32, %c0_i32_0 : i32, i32
  }
  func.func @transform_3(%arg0: i32) -> (i32, i32) {
    %c0_i32 = arith.constant 0 : i32
    %c0_i32_0 = arith.constant 0 : i32
    %c0_i32_1 = arith.constant 0 : i32
    return %c0_i32, %c0_i32_0 : i32, i32
  }
  func.func @transform_4(%arg0: i32) -> (i32, i32) {
    %c0_i32 = arith.constant 0 : i32
    %c0_i32_0 = arith.constant 0 : i32
    %c0_i32_1 = arith.constant 0 : i32
    return %c0_i32, %c0_i32_0 : i32, i32
  }
  func.func @transform_5(%arg0: i32) -> (i32, i32) {
    %c0_i32 = arith.constant 0 : i32
    %c0_i32_0 = arith.constant 0 : i32
    %c0_i32_1 = arith.constant 0 : i32
    return %c0_i32, %c0_i32_0 : i32, i32
  }
  func.func @transform_6(%arg0: i32) -> (i32, i32) {
    %c0_i32 = arith.constant 0 : i32
    %c0_i32_0 = arith.constant 0 : i32
    %c0_i32_1 = arith.constant 0 : i32
    return %c0_i32, %c0_i32_0 : i32, i32
  }
  func.func @transform_7(%arg0: i32) -> (i32, i32) {
    %c0_i32 = arith.constant 0 : i32
    %c0_i32_0 = arith.constant 0 : i32
    %c0_i32_1 = arith.constant 0 : i32
    return %c0_i32, %c0_i32_0 : i32, i32
  }
}

</mosaic_0001>

<bundles_post_ra>
// kernel: sequence_model_forward.1
= control target key start
LH: loop header
LB: loop body
LE: loop exit
PB: predicated region body
PF: predicated region fallthrough
CT: control target
= control target key end

     0   :  { %vm42_vm0 = vcmask 261120   ;;  %v1055_v11 = vmov 0.0   ;;  %s1056_s23 = smov 64   ;;  %s1357_s1 = inlined_call_operand.vmem [shape: f32[32,128], index: 1, kind: input, shape index: {}]   ;;  %s1358_s3 = inlined_call_operand.vmem [shape: f32[32,128], index: 3, kind: input, shape index: {}]   ;;  %s1359_s0 = inlined_call_operand.vmem [shape: f32[64,32], index: 0, kind: input, shape index: {}]   ;;  %s1360_s2 = inlined_call_operand.vmem [shape: f32[1,128], index: 2, kind: input, shape index: {}]   ;;  %s1361_s4 = inlined_call_operand.vmem [shape: f32[1,128], index: 4, kind: input, shape index: {}]   ;;  %s1362_s5 = inlined_call_operand.vmem [shape: f32[32,128], index: 5, kind: input, shape index: {}]   ;;  %s1363_s6 = inlined_call_operand.vmem [shape: f32[1,128], index: 6, kind: input, shape index: {}]   ;;  %s1364_s7 = inlined_call_operand.vmem [shape: f32[64,128], index: 7, kind: output, shape index: {}]  }
   0x1   :  { %v37_v0 = vld [vmem:[%s1357_s1 + $0x18] sm:$0xff]  ;;  %v36_v1 = vld [vmem:[%s1357_s1 + $0x10] sm:$0xff]  ;;  %v35_v3 = vld [vmem:[%s1357_s1 + $0x8] sm:$0xff] }
   0x2   :  { %961 = vmatpush.msra.mxu2 %v37_v0  ;;  %v1107_v2 = vld [vmem:[%s1358_s3 + $0x18] sm:$0xff]  ;;  %79 = vmatpush.msra.mxu0 %v37_v0  ;;  %v1117_v4 = vld [vmem:[%s1358_s3 + $0x10] sm:$0xff]  ;;  %v34_v5 = vld [vmem:[%s1357_s1] sm:$0xff] }
   0x3   :  { %274 = vmatpush.msra.mxu3 %v1107_v2  ;;  %341 = vmatpush.msra.mxu1 %v1107_v2  ;;  %v32_v6 = vld [vmem:[%s1359_s0 + $0x30] sm:$0xff]  ;;  %v1130_v7 = vld [vmem:[%s1358_s3 + $0x8] sm:$0xff]  ;;  %v26_v8 = vld [vmem:[%s1359_s0] sm:$0xff] }
   0x4   :  { %962 = vmatpush.msra.mxu2 %v36_v1  ;;  %80 = vmatpush.msra.mxu0 %v36_v1  ;;  %v1141_v9 = vld [vmem:[%s1358_s3] sm:$0xff]  ;;  %v33_v10 = vld [vmem:[%s1359_s0 + $0x38] sm:$0xff]  ;;  %v27_v44 = vld [vmem:[%s1359_s0 + $0x8] sm:$0xff] }
   0x5   :  { %275 = vmatpush.msra.mxu3 %v1117_v4  ;;  %342 = vmatpush.msra.mxu1 %v1117_v4  ;;  %v1177_v14 = vld [vmem:[%s1361_s4] ss:$0 sm:$0xff] }
   0x6   :  { %963 = vmatpush.msra.mxu2 %v35_v3  ;;  %81 = vmatpush.msra.mxu0 %v35_v3  ;;  %v1184_v18 = vld [vmem:[%s1360_s2] ss:$0 sm:$0xff]  ;;  %s1057_s2 = smov 96  }
   0x7   :  { %276 = vmatpush.msra.mxu3 %v1130_v7  ;;  %343 = vmatpush.msra.mxu1 %v1130_v7 }
   0x8   :  { %964 = vmatpush.msra.mxu2 %v34_v5  ;;  %82 = vmatpush.msra.mxu0 %v34_v5 }
   0x9   :  { %936 = vmatmul.msk.f32.vlgmr.msra.gmra.mxu2 %vm42_vm0, %v32_v6  ;;  %930 = vmatmul.msk.f32.vlgmr.msra.gmra.mxu0 %vm42_vm0, %v26_v8 }
   0xa   :  { %140 = vmatpush.msrb.mxu2 %v1107_v2  ;;  %277 = vmatpush.msra.mxu3 %v1141_v9 }
   0xb   :  { %344 = vmatpush.msra.mxu1 %v1141_v9 }
   0xc   :  { %475 = vmatpush.msrb.mxu3 %v1107_v2  ;;  %141 = vmatpush.msrb.mxu2 %v1117_v4 }
   0xd   :  { %542 = vmatpush.msrb.mxu1 %v1107_v2 }
   0xe   :  { %476 = vmatpush.msrb.mxu3 %v1117_v4  ;;  %142 = vmatpush.msrb.mxu2 %v1130_v7 }
   0xf   :  { %543 = vmatpush.msrb.mxu1 %v1117_v4 }
  0x10   :  { %477 = vmatpush.msrb.mxu3 %v1130_v7  ;;  %143 = vmatpush.msrb.mxu2 %v1141_v9 }
  0x11   :  { %544 = vmatpush.msrb.mxu1 %v1130_v7  ;;  %937 = vmatmul.msk.f32.gmra.mxu2 %vm42_vm0, %v33_v10  ;;  %v28_v10 = vld [vmem:[%s1359_s0 + $0x10] sm:$0xff] }
  0x12   :  { %478 = vmatpush.msrb.mxu3 %v1141_v9  ;;  %207 = vmatpush.msra.mxu2 %v1107_v2 }
  0x13   :  { %545 = vmatpush.msrb.mxu1 %v1141_v9  ;;  %931 = vmatmul.msk.f32.gmra.mxu0 %vm42_vm0, %v27_v44  ;;  %v29_v44 = vld [vmem:[%s1359_s0 + $0x18] sm:$0xff] }
  0x14   :  { %208 = vmatpush.msra.mxu2 %v1117_v4 }
  0x16   :  { %209 = vmatpush.msra.mxu2 %v1130_v7 }
  0x18   :  { %210 = vmatpush.msra.mxu2 %v1141_v9 }
  0x19   :  { %144 = vmatmul.f32.vlgmr.msrb.gmra.mxu2 %v1055_v11 }
  0x1a   :  { %408 = vmatpush.msrb.mxu2 %v1107_v2 }
  0x1b   :  { %932 = vmatmul.msk.f32.gmra.mxu0 %vm42_vm0, %v28_v10  ;;  %v30_v10 = vld [vmem:[%s1359_s0 + $0x20] sm:$0xff] }
  0x1c   :  { %409 = vmatpush.msrb.mxu2 %v1117_v4 }
  0x1e   :  { %410 = vmatpush.msrb.mxu2 %v1130_v7 }
  0x20   :  { %411 = vmatpush.msrb.mxu2 %v1141_v9 }
  0x23   :  { %933 = vmatmul.msk.f32.gmra.mxu0 %vm42_vm0, %v29_v44  ;;  %v672_v44 = vld [vmem:[%s1362_s5 + $0x18] sm:$0xff] }
  0x2b   :  { %934 = vmatmul.msk.f32.gmra.mxu0 %vm42_vm0, %v30_v10 }
  0x86   :  { %v84_v17 = vpop.f32.mrf.mxu0 }
  0x87   :  { %v85_v19 = vadd.f32 %v1184_v18, %v84_v17 }
  0x8c   :  { %v1170_v12 = vpop.f32.mrf.mxu2 }
  0x90   :  { %v87_v48 = vpop.f32.mrf.mxu0 }
  0x91   :  { %v88_v49 = vadd.f32 %v1184_v18, %v87_v48 }
  0x94   :  { %v1172_v13 = vpop.f32.mrf.mxu2 }
  0x98   :  { %v90_v17 = vpop.f32.mrf.mxu0 }
  0x9c   :  { %v145_v15 = vpop.f32.mrf.mxu2 }
  0x9d   :  { %v146_v16 = vadd.f32 %v1177_v14, %v145_v15 }
  0x9f   :  { %169 = vrot.lane.b32.xlu0 %v146_v16, %s1056_s23  ;;  %v148_v20 = vadd.f32 %v146_v16, %v85_v19 }
  0xa0   :  { %v93_v48 = vpop.f32.mrf.mxu0 }
  0xa1   :  { %v938_v21 = vmul.f32 -1.442695, %v148_v20 }
  0xa3   :  { %975 = vpow2.f32 %v938_v21 }
  0xa9   :  { %v976_v22 = vpop.eup %975 }
  0xaa   :  { %v152_v23 = vadd.f32 1.0, %v976_v22 }
  0xac   :  { %977 = vrcp.f32 %v152_v23  ;;  %v164_v29 = vand.u32 2147483648, %v152_v23  ;;  %vm158_vm2 = vweird.f32 %v152_v23  ;;  %v162_v30 = vand.u32 2147483647, %v152_v23 }
  0xae   :  { %v165_v32 = vor.u32 1.1754944e-38, %v164_v29  ;;  %vm163_vm4 = vcmp.eq.f32.partialorder %v162_v30, 8.507059e+37 }
  0xb2   :  { %v978_v24 = vpop.eup %977 }
  0xb3   :  { %v154_v25 = vmul.f32 %v978_v24, %v152_v23  ;;  %vm159_vm1 = vweird.f32 %v978_v24 }
  0xb4   :  { %vm160_vm3 = vmor %vm158_vm2, %vm159_vm1 }
  0xb5   :  { %v155_v26 = vsub.f32 1.0, %v154_v25 }
  0xb7   :  { %v156_v27 = vmul.f32 %v978_v24, %v155_v26 }
  0xb9   :  { %v157_v28 = vadd.f32 %v978_v24, %v156_v27 }
  0xbb   :  { %v161_v31 = vsel %vm160_vm3, %v978_v24, %v157_v28 }
  0xbc   :  { %v166_v34 = vsel %vm163_vm4, %v165_v32, %v161_v31 }
  0xbd   :  { %v179_v39 = vsub.f32 1.0, %v166_v34  ;;  %v185_v41 = vmul.f32 0.0, %v166_v34 }
 0x111   :  { %v170_v33 = vpop.permute.xlu0 %169 }
 0x112   :  { %v172_v35 = vmul.f32 %v170_v33, %v166_v34 }
 0x114   :  { %174 = vrot.lane.b32.xlu0 %v172_v35, %s1056_s23 }
 0x186   :  { %v175_v36 = vpop.permute.xlu0 %174 }
 0x187   :  { %v177_v37 = vadd.f32 %v175_v36, %v85_v19  ;;  %v91_v19 = vadd.f32 %v1184_v18, %v90_v17  ;;  %v96_v17 = vpop.f32.mrf.mxu0 }
 0x189   :  { %979 = vtanh.f32 %v177_v37 }
 0x18f   :  { %v980_v38 = vpop.eup %979 }
 0x190   :  { %181 = vrot.lane.b32.xlu1 %v980_v38, %s1057_s2 }
 0x202   :  { %v182_v40 = vpop.permute.xlu1 %181 }
 0x203   :  { %v184_v42 = vmul.f32 %v182_v40, %v179_v39 }
 0x205   :  { %v186_v43 = vadd.f32 %v185_v41, %v184_v42 }
 0x207   :  { %188 = vrot.lane.b32.xlu1 %v186_v43, %s1057_s2 }
 0x279   :  { %v189_v45 = vpop.permute.xlu1 %188 }
 0x27a   :  { %191 = vst.msk [vmem:[#allocation3] sm:$0xff] %vm42_vm0, %v189_v45  ;;  %939 = vmatmul.msk.f32.vlgmr.msra.gmra.mxu2 %vm42_vm0, %v189_v45 }
 0x27b   :  { %609 = vmatpush.msra.mxu2 %v1107_v2 }
 0x27d   :  { %610 = vmatpush.msra.mxu2 %v1117_v4 }
 0x27f   :  { %611 = vmatpush.msra.mxu2 %v1130_v7 }
 0x281   :  { %612 = vmatpush.msra.mxu2 %v1141_v9 }
 0x2fd   :  { %v212_v46 = vpop.f32.mrf.mxu2 }
 0x2fe   :  { %v213_v47 = vadd.f32 %v1177_v14, %v212_v46 }
 0x300   :  { %236 = vrot.lane.b32.xlu2 %v213_v47, %s1056_s23  ;;  %v215_v50 = vadd.f32 %v213_v47, %v88_v49 }
 0x302   :  { %v940_v51 = vmul.f32 -1.442695, %v215_v50 }
 0x304   :  { %981 = vpow2.f32 %v940_v51 }
 0x30a   :  { %v982_v52 = vpop.eup %981 }
 0x30b   :  { %v219_v53 = vadd.f32 1.0, %v982_v52 }
 0x30d   :  { %983 = vrcp.f32 %v219_v53  ;;  %v231_v59 = vand.u32 2147483648, %v219_v53  ;;  %vm225_vm6 = vweird.f32 %v219_v53  ;;  %v229_v60 = vand.u32 2147483647, %v219_v53 }
 0x30f   :  { %v232_v62 = vor.u32 1.1754944e-38, %v231_v59  ;;  %vm230_vm8 = vcmp.eq.f32.partialorder %v229_v60, 8.507059e+37 }
 0x313   :  { %v984_v54 = vpop.eup %983 }
 0x314   :  { %v221_v55 = vmul.f32 %v984_v54, %v219_v53  ;;  %vm226_vm5 = vweird.f32 %v984_v54 }
 0x315   :  { %vm227_vm7 = vmor %vm225_vm6, %vm226_vm5 }
 0x316   :  { %v222_v56 = vsub.f32 1.0, %v221_v55 }
 0x318   :  { %v223_v57 = vmul.f32 %v984_v54, %v222_v56 }
 0x31a   :  { %v224_v58 = vadd.f32 %v984_v54, %v223_v57 }
 0x31c   :  { %v228_v61 = vsel %vm227_vm7, %v984_v54, %v224_v58 }
 0x31d   :  { %v233_v0 = vsel %vm230_vm8, %v232_v62, %v228_v61 }
 0x31e   :  { %v246_v5 = vsub.f32 1.0, %v233_v0  ;;  %v252_v7 = vmul.f32 %v233_v0, %v186_v43 }
 0x35a   :  { %v237_v63 = vpop.permute.xlu2 %236 }
 0x35b   :  { %v239_v1 = vmul.f32 %v237_v63, %v233_v0 }
 0x35d   :  { %241 = vrot.lane.b32.xlu2 %v239_v1, %s1056_s23 }
 0x3b7   :  { %v242_v2 = vpop.permute.xlu2 %241 }
 0x3b8   :  { %v244_v3 = vadd.f32 %v242_v2, %v88_v49  ;;  %v94_v49 = vadd.f32 %v1184_v18, %v93_v48  ;;  %v669_v48 = vld [vmem:[%s1362_s5] sm:$0xff] }
 0x3ba   :  { %985 = vtanh.f32 %v244_v3 }
 0x3c0   :  { %v986_v4 = vpop.eup %985 }
 0x3c1   :  { %248 = vrot.lane.b32.xlu0 %v986_v4, %s1057_s2 }
 0x433   :  { %v249_v6 = vpop.permute.xlu0 %248 }
 0x434   :  { %v251_v8 = vmul.f32 %v249_v6, %v246_v5 }
 0x436   :  { %v253_v9 = vadd.f32 %v252_v7, %v251_v8 }
 0x438   :  { %255 = vrot.lane.b32.xlu1 %v253_v9, %s1057_s2 }
 0x4aa   :  { %v256_v11 = vpop.permute.xlu1 %255 }
 0x4ab   :  { %258 = vst.msk [vmem:[#allocation3 + $0x8] sm:$0xff] %vm42_vm0, %v256_v11  ;;  %941 = vmatmul.msk.f32.vlgmr.msra.gmra.mxu3 %vm42_vm0, %v256_v11 }
 0x4ac   :  { %965 = vmatpush.msra.mxu3 %v672_v44 }
 0x52e   :  { %v279_v15 = vpop.f32.mrf.mxu3 }
 0x52f   :  { %v280_v16 = vadd.f32 %v1177_v14, %v279_v15 }
 0x531   :  { %303 = vrot.lane.b32.xlu2 %v280_v16, %s1056_s23  ;;  %v282_v20 = vadd.f32 %v280_v16, %v91_v19 }
 0x533   :  { %v942_v21 = vmul.f32 -1.442695, %v282_v20 }
 0x535   :  { %987 = vpow2.f32 %v942_v21 }
 0x53b   :  { %v988_v22 = vpop.eup %987 }
 0x53c   :  { %v286_v23 = vadd.f32 1.0, %v988_v22 }
 0x53e   :  { %989 = vrcp.f32 %v286_v23  ;;  %v298_v29 = vand.u32 2147483648, %v286_v23  ;;  %vm292_vm10 = vweird.f32 %v286_v23  ;;  %v296_v30 = vand.u32 2147483647, %v286_v23 }
 0x540   :  { %v299_v32 = vor.u32 1.1754944e-38, %v298_v29  ;;  %vm297_vm12 = vcmp.eq.f32.partialorder %v296_v30, 8.507059e+37 }
 0x544   :  { %v990_v24 = vpop.eup %989 }
 0x545   :  { %v288_v25 = vmul.f32 %v990_v24, %v286_v23  ;;  %vm293_vm9 = vweird.f32 %v990_v24 }
 0x546   :  { %vm294_vm11 = vmor %vm292_vm10, %vm293_vm9 }
 0x547   :  { %v289_v26 = vsub.f32 1.0, %v288_v25 }
 0x549   :  { %v290_v27 = vmul.f32 %v990_v24, %v289_v26 }
 0x54b   :  { %v291_v28 = vadd.f32 %v990_v24, %v290_v27 }
 0x54d   :  { %v295_v31 = vsel %vm294_vm11, %v990_v24, %v291_v28 }
 0x54e   :  { %v300_v34 = vsel %vm297_vm12, %v299_v32, %v295_v31 }
 0x54f   :  { %v313_v39 = vsub.f32 1.0, %v300_v34  ;;  %v319_v41 = vmul.f32 %v300_v34, %v253_v9 }
 0x58b   :  { %v304_v33 = vpop.permute.xlu2 %303 }
 0x58c   :  { %v306_v35 = vmul.f32 %v304_v33, %v300_v34 }
 0x58e   :  { %308 = vrot.lane.b32.xlu0 %v306_v35, %s1056_s23 }
 0x600   :  { %v309_v36 = vpop.permute.xlu0 %308 }
 0x601   :  { %v311_v37 = vadd.f32 %v309_v36, %v91_v19  ;;  %v97_v19 = vadd.f32 %v1184_v18, %v96_v17 }
 0x603   :  { %991 = vtanh.f32 %v311_v37 }
 0x609   :  { %v992_v38 = vpop.eup %991 }
 0x60a   :  { %315 = vrot.lane.b32.xlu1 %v992_v38, %s1057_s2 }
 0x67c   :  { %v316_v40 = vpop.permute.xlu1 %315 }
 0x67d   :  { %v318_v42 = vmul.f32 %v316_v40, %v313_v39 }
 0x67f   :  { %v320_v43 = vadd.f32 %v319_v41, %v318_v42 }
 0x681   :  { %322 = vrot.lane.b32.xlu2 %v320_v43, %s1057_s2 }
 0x6db   :  { %v323_v45 = vpop.permute.xlu2 %322 }
 0x6dc   :  { %325 = vst.msk [vmem:[#allocation3 + $0x10] sm:$0xff] %vm42_vm0, %v323_v45  ;;  %943 = vmatmul.msk.f32.vlgmr.msra.gmra.mxu1 %vm42_vm0, %v323_v45  ;;  %v671_v45 = vld [vmem:[%s1362_s5 + $0x10] sm:$0xff] }
 0x6dd   :  { %713 = vmatpush.msra.mxu1 %v672_v44  ;;  %966 = vmatpush.msra.mxu3 %v671_v45 }
 0x6df   :  { %714 = vmatpush.msra.mxu1 %v671_v45 }
 0x759   :  { %v346_v46 = vpop.f32.mrf.mxu1 }
 0x75a   :  { %v347_v47 = vadd.f32 %v1177_v14, %v346_v46  ;;  %v31_v46 = vld [vmem:[%s1359_s0 + $0x28] sm:$0xff] }
 0x75b   :  { %935 = vmatmul.msk.f32.gmra.mxu0 %vm42_vm0, %v31_v46 }
 0x75c   :  { %370 = vrot.lane.b32.xlu0 %v347_v47, %s1056_s23  ;;  %v349_v50 = vadd.f32 %v347_v47, %v94_v49  ;;  %v670_v47 = vld [vmem:[%s1362_s5 + $0x8] sm:$0xff] }
 0x75d   :  { %967 = vmatpush.msra.mxu3 %v670_v47  ;;  %715 = vmatpush.msra.mxu1 %v670_v47 }
 0x75e   :  { %v944_v51 = vmul.f32 -1.442695, %v349_v50 }
 0x75f   :  { %968 = vmatpush.msra.mxu3 %v669_v48  ;;  %716 = vmatpush.msra.mxu1 %v669_v48 }
 0x760   :  { %993 = vpow2.f32 %v944_v51 }
 0x766   :  { %v994_v52 = vpop.eup %993 }
 0x767   :  { %v353_v53 = vadd.f32 1.0, %v994_v52 }
 0x769   :  { %995 = vrcp.f32 %v353_v53  ;;  %v365_v59 = vand.u32 2147483648, %v353_v53  ;;  %vm359_vm14 = vweird.f32 %v353_v53  ;;  %v363_v60 = vand.u32 2147483647, %v353_v53 }
 0x76b   :  { %v366_v62 = vor.u32 1.1754944e-38, %v365_v59  ;;  %vm364_vm1 = vcmp.eq.f32.partialorder %v363_v60, 8.507059e+37 }
 0x76f   :  { %v996_v54 = vpop.eup %995 }
 0x770   :  { %v355_v55 = vmul.f32 %v996_v54, %v353_v53  ;;  %vm360_vm13 = vweird.f32 %v996_v54 }
 0x771   :  { %vm361_vm15 = vmor %vm359_vm14, %vm360_vm13 }
 0x772   :  { %v356_v56 = vsub.f32 1.0, %v355_v55 }
 0x774   :  { %v357_v57 = vmul.f32 %v996_v54, %v356_v56 }
 0x776   :  { %v358_v58 = vadd.f32 %v996_v54, %v357_v57 }
 0x778   :  { %v362_v61 = vsel %vm361_vm15, %v996_v54, %v358_v58 }
 0x779   :  { %v367_v0 = vsel %vm364_vm1, %v366_v62, %v362_v61 }
 0x77a   :  { %v380_v5 = vsub.f32 1.0, %v367_v0  ;;  %v386_v7 = vmul.f32 %v367_v0, %v320_v43 }
 0x7ce   :  { %v371_v63 = vpop.permute.xlu0 %370 }
 0x7cf   :  { %v373_v1 = vmul.f32 %v371_v63, %v367_v0 }
 0x7d1   :  { %375 = vrot.lane.b32.xlu1 %v373_v1, %s1056_s23 }
 0x7d8   :  { %v99_v53 = vpop.f32.mrf.mxu0 }
 0x7d9   :  { %v100_v54 = vadd.f32 %v1184_v18, %v99_v53 }
 0x843   :  { %v376_v2 = vpop.permute.xlu1 %375 }
 0x844   :  { %v378_v3 = vadd.f32 %v376_v2, %v94_v49 }
 0x846   :  { %997 = vtanh.f32 %v378_v3 }
 0x84c   :  { %v998_v4 = vpop.eup %997 }
 0x84d   :  { %382 = vrot.lane.b32.xlu2 %v998_v4, %s1057_s2 }
 0x8a7   :  { %v383_v6 = vpop.permute.xlu2 %382 }
 0x8a8   :  { %v385_v8 = vmul.f32 %v383_v6, %v380_v5 }
 0x8aa   :  { %v387_v9 = vadd.f32 %v386_v7, %v385_v8 }
 0x8ac   :  { %389 = vrot.lane.b32.xlu0 %v387_v9, %s1057_s2 }
 0x91e   :  { %v390_v11 = vpop.permute.xlu0 %389 }
 0x91f   :  { %392 = vst.msk [vmem:[#allocation3 + $0x18] sm:$0xff] %vm42_vm0, %v390_v11  ;;  %945 = vmatmul.msk.f32.vlgmr.msrb.gmra.mxu2 %vm42_vm0, %v390_v11 }
 0x9a2   :  { %v413_v15 = vpop.f32.mrf.mxu2 }
 0x9a3   :  { %v414_v16 = vadd.f32 %v1177_v14, %v413_v15 }
 0x9a5   :  { %437 = vrot.lane.b32.xlu1 %v414_v16, %s1056_s23  ;;  %v416_v20 = vadd.f32 %v414_v16, %v97_v19 }
 0x9a7   :  { %v946_v21 = vmul.f32 -1.442695, %v416_v20  ;;  %v661_v20 = vld [vmem:[#allocation3] sm:$0xff] }
 0x9a9   :  { %999 = vpow2.f32 %v946_v21 }
 0x9af   :  { %v1000_v22 = vpop.eup %999 }
 0x9b0   :  { %v420_v23 = vadd.f32 1.0, %v1000_v22  ;;  %v662_v22 = vld [vmem:[#allocation3 + $0x8] sm:$0xff] }
 0x9b2   :  { %1001 = vrcp.f32 %v420_v23  ;;  %v432_v29 = vand.u32 2147483648, %v420_v23  ;;  %vm426_vm3 = vweird.f32 %v420_v23  ;;  %v430_v30 = vand.u32 2147483647, %v420_v23 }
 0x9b4   :  { %v433_v32 = vor.u32 1.1754944e-38, %v432_v29  ;;  %vm431_vm5 = vcmp.eq.f32.partialorder %v430_v30, 8.507059e+37 }
 0x9b8   :  { %v1002_v24 = vpop.eup %1001 }
 0x9b9   :  { %v422_v25 = vmul.f32 %v1002_v24, %v420_v23  ;;  %vm427_vm2 = vweird.f32 %v1002_v24  ;;  %v663_v23 = vld [vmem:[#allocation3 + $0x10] sm:$0xff] }
 0x9ba   :  { %vm428_vm4 = vmor %vm426_vm3, %vm427_vm2 }
 0x9bb   :  { %v423_v26 = vsub.f32 1.0, %v422_v25 }
 0x9bd   :  { %v424_v27 = vmul.f32 %v1002_v24, %v423_v26 }
 0x9bf   :  { %v425_v28 = vadd.f32 %v1002_v24, %v424_v27  ;;  %v103_v27 = vadd.f32 %v1184_v18, %v1170_v12 }
 0x9c1   :  { %v429_v31 = vsel %vm428_vm4, %v1002_v24, %v425_v28  ;;  %v664_v24 = vld [vmem:[#allocation3 + $0x18] sm:$0xff] }
 0x9c2   :  { %v434_v34 = vsel %vm431_vm5, %v433_v32, %v429_v31 }
 0x9c3   :  { %v447_v39 = vsub.f32 1.0, %v434_v34  ;;  %v453_v41 = vmul.f32 %v434_v34, %v387_v9 }
 0xa17   :  { %v438_v33 = vpop.permute.xlu1 %437 }
 0xa18   :  { %v440_v35 = vmul.f32 %v438_v33, %v434_v34 }
 0xa1a   :  { %442 = vrot.lane.b32.xlu2 %v440_v35, %s1056_s23 }
 0xa74   :  { %v443_v36 = vpop.permute.xlu2 %442 }
 0xa75   :  { %v445_v37 = vadd.f32 %v443_v36, %v97_v19 }
 0xa77   :  { %1003 = vtanh.f32 %v445_v37 }
 0xa7d   :  { %v1004_v38 = vpop.eup %1003 }
 0xa7e   :  { %449 = vrot.lane.b32.xlu0 %v1004_v38, %s1057_s2 }
 0xaf0   :  { %v450_v40 = vpop.permute.xlu0 %449 }
 0xaf1   :  { %v452_v42 = vmul.f32 %v450_v40, %v447_v39 }
 0xaf3   :  { %v454_v43 = vadd.f32 %v453_v41, %v452_v42 }
 0xaf5   :  { %456 = vrot.lane.b32.xlu1 %v454_v43, %s1057_s2 }
 0xb67   :  { %v457_v49 = vpop.permute.xlu1 %456 }
 0xb68   :  { %459 = vst.msk [vmem:[#allocation3 + $0x20] sm:$0xff] %vm42_vm0, %v457_v49  ;;  %947 = vmatmul.msk.f32.vlgmr.msrb.gmra.mxu3 %vm42_vm0, %v457_v49 }
 0xb6f   :  { %v665_v50 = vld [vmem:[#allocation3 + $0x20] sm:$0xff] }
 0xb70   :  { %957 = vmatmul.msk.f32.vlgmr.msra.gmra.mxu3 %vm42_vm0, %v665_v50 }
 0xbeb   :  { %v480_v51 = vpop.f32.mrf.mxu3 }
 0xbec   :  { %v481_v52 = vadd.f32 %v1177_v14, %v480_v51 }
 0xbee   :  { %504 = vrot.lane.b32.xlu2 %v481_v52, %s1056_s23  ;;  %v483_v55 = vadd.f32 %v481_v52, %v100_v54 }
 0xbf0   :  { %v948_v56 = vmul.f32 -1.442695, %v483_v55  ;;  %v106_v55 = vadd.f32 %v1184_v18, %v1172_v13 }
 0xbf2   :  { %1005 = vpow2.f32 %v948_v56 }
 0xbf8   :  { %v1006_v57 = vpop.eup %1005 }
 0xbf9   :  { %v487_v58 = vadd.f32 1.0, %v1006_v57 }
 0xbfb   :  { %1007 = vrcp.f32 %v487_v58  ;;  %v499_v0 = vand.u32 2147483648, %v487_v58  ;;  %vm493_vm7 = vweird.f32 %v487_v58  ;;  %v497_v1 = vand.u32 2147483647, %v487_v58 }
 0xbfd   :  { %v500_v3 = vor.u32 1.1754944e-38, %v499_v0  ;;  %vm498_vm9 = vcmp.eq.f32.partialorder %v497_v1, 8.507059e+37 }
 0xc01   :  { %v1008_v59 = vpop.eup %1007 }
 0xc02   :  { %v489_v60 = vmul.f32 %v1008_v59, %v487_v58  ;;  %vm494_vm6 = vweird.f32 %v1008_v59 }
 0xc03   :  { %vm495_vm8 = vmor %vm493_vm7, %vm494_vm6 }
 0xc04   :  { %v490_v61 = vsub.f32 1.0, %v489_v60 }
 0xc06   :  { %v491_v62 = vmul.f32 %v1008_v59, %v490_v61 }
 0xc08   :  { %v492_v63 = vadd.f32 %v1008_v59, %v491_v62 }
 0xc0a   :  { %v496_v2 = vsel %vm495_vm8, %v1008_v59, %v492_v63 }
 0xc0b   :  { %v501_v5 = vsel %vm498_vm9, %v500_v3, %v496_v2 }
 0xc0c   :  { %v514_v10 = vsub.f32 1.0, %v501_v5  ;;  %v520_v15 = vmul.f32 %v501_v5, %v454_v43 }
 0xc48   :  { %v505_v4 = vpop.permute.xlu2 %504 }
 0xc49   :  { %v507_v6 = vmul.f32 %v505_v4, %v501_v5 }
 0xc4b   :  { %509 = vrot.lane.b32.xlu0 %v507_v6, %s1056_s23 }
 0xcbd   :  { %v510_v7 = vpop.permute.xlu0 %509 }
 0xcbe   :  { %v512_v8 = vadd.f32 %v510_v7, %v100_v54 }
 0xcc0   :  { %1009 = vtanh.f32 %v512_v8  ;;  %v1295_v8 = vld [vmem:[%s1363_s6] ss:$0 sm:$0xff] }
 0xcc6   :  { %v1010_v9 = vpop.eup %1009 }
 0xcc7   :  { %516 = vrot.lane.b32.xlu1 %v1010_v9, %s1057_s2 }
 0xd39   :  { %v517_v11 = vpop.permute.xlu1 %516 }
 0xd3a   :  { %v519_v16 = vmul.f32 %v517_v11, %v514_v10 }
 0xd3c   :  { %v521_v17 = vadd.f32 %v520_v15, %v519_v16  ;;  %v730_v15 = vpop.f32.mrf.mxu3 }
 0xd3d   :  { %v731_v16 = vadd.f32 %v1295_v8, %v730_v15 }
 0xd3e   :  { %523 = vrot.lane.b32.xlu2 %v521_v17, %s1057_s2 }
 0xd98   :  { %v524_v19 = vpop.permute.xlu2 %523 }
 0xd99   :  { %526 = vst.msk [vmem:[#allocation3 + $0x28] sm:$0xff] %vm42_vm0, %v524_v19  ;;  %949 = vmatmul.msk.f32.vlgmr.msrb.gmra.mxu1 %vm42_vm0, %v524_v19 }
 0xda0   :  { %v666_v21 = vld [vmem:[#allocation3 + $0x28] sm:$0xff] }
 0xda1   :  { %953 = vmatmul.msk.f32.vlgmr.msra.gmra.mxu1 %vm42_vm0, %v661_v20  ;;  %958 = vmatmul.msk.f32.gmra.mxu3 %vm42_vm0, %v666_v21 }
 0xda9   :  { %954 = vmatmul.msk.f32.gmra.mxu1 %vm42_vm0, %v662_v22 }
 0xdb1   :  { %955 = vmatmul.msk.f32.gmra.mxu1 %vm42_vm0, %v663_v23 }
 0xdb9   :  { %956 = vmatmul.msk.f32.gmra.mxu1 %vm42_vm0, %v664_v24 }
 0xe16   :  { %v547_v25 = vpop.f32.mrf.mxu1 }
 0xe17   :  { %v548_v26 = vadd.f32 %v1177_v14, %v547_v25 }
 0xe19   :  { %571 = vrot.lane.b32.xlu0 %v548_v26, %s1056_s23  ;;  %v550_v28 = vadd.f32 %v548_v26, %v103_v27 }
 0xe1b   :  { %v950_v29 = vmul.f32 -1.442695, %v550_v28 }
 0xe1d   :  { %1011 = vpow2.f32 %v950_v29 }
 0xe1e   :  { %v718_v5 = vpop.f32.mrf.mxu1 }
 0xe1f   :  { %v719_v9 = vadd.f32 %v1295_v8, %v718_v5 }
 0xe23   :  { %v1012_v30 = vpop.eup %1011 }
 0xe24   :  { %v554_v31 = vadd.f32 1.0, %v1012_v30  ;;  %v733_v22 = vpop.f32.mrf.mxu3 }
 0xe25   :  { %v1303_v23 = vadd.f32 %v1295_v8, %v733_v22 }
 0xe26   :  { %1013 = vrcp.f32 %v554_v31  ;;  %v566_v37 = vand.u32 2147483648, %v554_v31  ;;  %vm560_vm11 = vweird.f32 %v554_v31  ;;  %v564_v38 = vand.u32 2147483647, %v554_v31  ;;  %v721_v6 = vpop.f32.mrf.mxu1 }
 0xe27   :  { %v722_v21 = vadd.f32 %v1295_v8, %v721_v6 }
 0xe28   :  { %v567_v40 = vor.u32 1.1754944e-38, %v566_v37  ;;  %vm565_vm13 = vcmp.eq.f32.partialorder %v564_v38, 8.507059e+37 }
 0xe2c   :  { %v1014_v32 = vpop.eup %1013 }
 0xe2d   :  { %v556_v33 = vmul.f32 %v1014_v32, %v554_v31  ;;  %vm561_vm10 = vweird.f32 %v1014_v32 }
 0xe2e   :  { %vm562_vm12 = vmor %vm560_vm11, %vm561_vm10  ;;  %v724_v7 = vpop.f32.mrf.mxu1 }
 0xe2f   :  { %v557_v34 = vsub.f32 1.0, %v556_v33  ;;  %v1309_v37 = vadd.f32 %v1295_v8, %v724_v7 }
 0xe31   :  { %v558_v35 = vmul.f32 %v1014_v32, %v557_v34 }
 0xe33   :  { %v559_v36 = vadd.f32 %v1014_v32, %v558_v35 }
 0xe35   :  { %v563_v39 = vsel %vm562_vm12, %v1014_v32, %v559_v36 }
 0xe36   :  { %v568_v41 = vsel %vm565_vm13, %v567_v40, %v563_v39  ;;  %v727_v10 = vpop.f32.mrf.mxu1 }
 0xe37   :  { %v581_v46 = vsub.f32 1.0, %v568_v41  ;;  %v587_v48 = vmul.f32 %v568_v41, %v521_v17  ;;  %v728_v11 = vadd.f32 %v1295_v8, %v727_v10 }
 0xe8b   :  { %v572_v12 = vpop.permute.xlu0 %571 }
 0xe8c   :  { %v574_v42 = vmul.f32 %v572_v12, %v568_v41 }
 0xe8e   :  { %576 = vrot.lane.b32.xlu1 %v574_v42, %s1056_s23 }
 0xf00   :  { %v577_v43 = vpop.permute.xlu1 %576 }
 0xf01   :  { %v579_v44 = vadd.f32 %v577_v43, %v103_v27 }
 0xf03   :  { %1015 = vtanh.f32 %v579_v44 }
 0xf09   :  { %v1016_v45 = vpop.eup %1015 }
 0xf0a   :  { %583 = vrot.lane.b32.xlu2 %v1016_v45, %s1057_s2 }
 0xf64   :  { %v584_v47 = vpop.permute.xlu2 %583 }
 0xf65   :  { %v586_v49 = vmul.f32 %v584_v47, %v581_v46 }
 0xf67   :  { %v1280_v50 = vadd.f32 %v587_v48, %v586_v49 }
 0xf69   :  { %590 = vrot.lane.b32.xlu0 %v1280_v50, %s1057_s2 }
 0xfdb   :  { %v591_v51 = vpop.permute.xlu0 %590 }
 0xfdc   :  { %593 = vst.msk [vmem:[#allocation3 + $0x30] sm:$0xff] %vm42_vm0, %v591_v51  ;;  %951 = vmatmul.msk.f32.vlgmr.msra.gmra.mxu2 %vm42_vm0, %v591_v51 }
 0xfe3   :  { %v667_v52 = vld [vmem:[#allocation3 + $0x30] sm:$0xff] }
 0xfe4   :  { %959 = vmatmul.msk.f32.gmra.mxu3 %vm42_vm0, %v667_v52 }
0x105f   :  { %v614_v53 = vpop.f32.mrf.mxu2 }
0x1060   :  { %v615_v54 = vadd.f32 %v1177_v14, %v614_v53 }
0x1062   :  { %638 = vrot.lane.b32.xlu1 %v615_v54, %s1056_s23  ;;  %v617_v56 = vadd.f32 %v615_v54, %v106_v55 }
0x1064   :  { %v952_v57 = vmul.f32 -1.442695, %v617_v56 }
0x1066   :  { %1017 = vpow2.f32 %v952_v57 }
0x1067   :  { %v736_v40 = vpop.f32.mrf.mxu3 }
0x1068   :  { %v737_v41 = vadd.f32 %v1295_v8, %v736_v40 }
0x106c   :  { %v1018_v58 = vpop.eup %1017 }
0x106d   :  { %v621_v59 = vadd.f32 1.0, %v1018_v58 }
0x106f   :  { %1019 = vrcp.f32 %v621_v59  ;;  %v633_v1 = vand.u32 2147483648, %v621_v59  ;;  %vm627_vm15 = vweird.f32 %v621_v59  ;;  %v631_v14 = vand.u32 2147483647, %v621_v59 }
0x1071   :  { %v634_v3 = vor.u32 1.1754944e-38, %v633_v1  ;;  %vm632_vm2 = vcmp.eq.f32.partialorder %v631_v14, 8.507059e+37 }
0x1075   :  { %v1020_v60 = vpop.eup %1019 }
0x1076   :  { %v623_v61 = vmul.f32 %v1020_v60, %v621_v59  ;;  %vm628_vm14 = vweird.f32 %v1020_v60 }
0x1077   :  { %vm629_vm1 = vmor %vm627_vm15, %vm628_vm14 }
0x1078   :  { %v624_v62 = vsub.f32 1.0, %v623_v61 }
0x107a   :  { %v625_v63 = vmul.f32 %v1020_v60, %v624_v62 }
0x107c   :  { %v626_v0 = vadd.f32 %v1020_v60, %v625_v63 }
0x107e   :  { %v630_v2 = vsel %vm629_vm1, %v1020_v60, %v626_v0 }
0x107f   :  { %v635_v18 = vsel %vm632_vm2, %v634_v3, %v630_v2 }
0x1080   :  { %v648_v32 = vsub.f32 1.0, %v635_v18  ;;  %v654_v34 = vmul.f32 %v635_v18, %v1280_v50 }
0x10d4   :  { %v639_v13 = vpop.permute.xlu1 %638 }
0x10d5   :  { %v641_v4 = vmul.f32 %v639_v13, %v635_v18 }
0x10d7   :  { %643 = vrot.lane.b32.xlu2 %v641_v4, %s1056_s23 }
0x1100   :  { %742 = vmax.xlane.f32.xlu2 %v719_v9 }
0x1108   :  { %748 = vmax.xlane.f32.xlu2 %v728_v11 }
0x1110   :  { %750 = vmax.xlane.f32.xlu2 %v731_v16 }
0x1131   :  { %v644_v17 = vpop.permute.xlu2 %643 }
0x1132   :  { %v646_v19 = vadd.f32 %v644_v17, %v106_v55 }
0x1134   :  { %1021 = vtanh.f32 %v646_v19 }
0x113a   :  { %v1022_v20 = vpop.eup %1021 }
0x113b   :  { %650 = vrot.lane.b32.xlu0 %v1022_v20, %s1057_s2 }
0x1165   :  { %744 = vmax.xlane.f32.xlu0 %v722_v21 }
0x116d   :  { %752 = vmax.xlane.f32.xlu0 %v1303_v23 }
0x1173   :  { %v743_v24 = vpop.xlane.xlu2 %742 }
0x1174   :  { %v758_v25 = vsub.f32 %v719_v9, %v743_v24 }
0x1176   :  { %v766_v26 = vmul.f32 1.442695, %v758_v25 }
0x1178   :  { %1023 = vpow2.f32 %v766_v26 }
0x117b   :  { %v749_v27 = vpop.xlane.xlu2 %748 }
0x117c   :  { %v761_v28 = vsub.f32 %v728_v11, %v749_v27 }
0x117e   :  { %v1024_v29 = vpop.eup %1023  ;;  %v772_v30 = vmul.f32 1.442695, %v761_v28 }
0x117f   :  { %782 = vadd.xlane.f32.xlu0 %v1024_v29 }
0x1180   :  { %1025 = vpow2.f32 %v772_v30 }
0x1183   :  { %v751_v42 = vpop.xlane.xlu2 %750 }
0x1184   :  { %v762_v43 = vsub.f32 %v731_v16, %v751_v42 }
0x1186   :  { %v1026_v31 = vpop.eup %1025  ;;  %v774_v44 = vmul.f32 1.442695, %v762_v43 }
0x1187   :  { %788 = vadd.xlane.f32.xlu0 %v1026_v31 }
0x11ad   :  { %v651_v33 = vpop.permute.xlu0 %650 }
0x11ae   :  { %v653_v35 = vmul.f32 %v651_v33, %v648_v32 }
0x11b0   :  { %v655_v36 = vadd.f32 %v654_v34, %v653_v35 }
0x11b2   :  { %657 = vrot.lane.b32.xlu1 %v655_v36, %s1057_s2 }
0x11d8   :  { %v745_v38 = vpop.xlane.xlu0 %744 }
0x11d9   :  { %v759_v39 = vsub.f32 %v722_v21, %v745_v38 }
0x11db   :  { %v768_v12 = vmul.f32 1.442695, %v759_v39 }
0x11dc   :  { %746 = vmax.xlane.f32.xlu1 %v1309_v37 }
0x11dd   :  { %1027 = vpow2.f32 %v768_v12 }
0x11de   :  { %1029 = vpow2.f32 %v774_v44 }
0x11e0   :  { %v1313_v45 = vpop.xlane.xlu0 %752 }
0x11e3   :  { %v1315_v46 = vpop.eup %1027 }
0x11e4   :  { %754 = vmax.xlane.f32.xlu1 %v737_v41  ;;  %v1318_v48 = vpop.eup %1029 }
0x11ec   :  { %784 = vadd.xlane.f32.xlu1 %v1315_v46 }
0x11f2   :  { %v783_v47 = vpop.xlane.xlu0 %782 }
0x11f3   :  { %1031 = vrcp.f32 %v783_v47  ;;  %v809_v53 = vand.u32 2147483648, %v783_v47  ;;  %v807_v55 = vand.u32 2147483647, %v783_v47  ;;  %vm803_vm4 = vweird.f32 %v783_v47 }
0x11f4   :  { %790 = vadd.xlane.f32.xlu1 %v1318_v48 }
0x11f5   :  { %v810_v58 = vor.u32 1.1754944e-38, %v809_v53  ;;  %vm808_vm6 = vcmp.eq.f32.partialorder %v807_v55, 8.507059e+37 }
0x11f9   :  { %v1032_v49 = vpop.eup %1031 }
0x11fa   :  { %v799_v50 = vmul.f32 %v1032_v49, %v783_v47  ;;  %v789_v51 = vpop.xlane.xlu0 %788  ;;  %vm804_vm3 = vweird.f32 %v1032_v49  ;;  %v763_v47 = vsub.f32 %v1303_v23, %v1313_v45 }
0x11fb   :  { %1033 = vrcp.f32 %v789_v51  ;;  %vm805_vm5 = vmor %vm803_vm4, %vm804_vm3  ;;  %v854_v0 = vand.u32 2147483648, %v789_v51  ;;  %v852_v14 = vand.u32 2147483647, %v789_v51  ;;  %vm848_vm8 = vweird.f32 %v789_v51 }
0x11fc   :  { %v800_v52 = vsub.f32 1.0, %v799_v50 }
0x11fd   :  { %v855_v3 = vor.u32 1.1754944e-38, %v854_v0  ;;  %vm853_vm10 = vcmp.eq.f32.partialorder %v852_v14, 8.507059e+37 }
0x11fe   :  { %v801_v54 = vmul.f32 %v1032_v49, %v800_v52 }
0x1200   :  { %v802_v56 = vadd.f32 %v1032_v49, %v801_v54 }
0x1201   :  { %v1034_v57 = vpop.eup %1033 }
0x1202   :  { %v806_v59 = vsel %vm805_vm5, %v1032_v49, %v802_v56  ;;  %v844_v60 = vmul.f32 %v1034_v57, %v789_v51  ;;  %vm849_vm7 = vweird.f32 %v1034_v57  ;;  %v776_v49 = vmul.f32 1.442695, %v763_v47 }
0x1203   :  { %v811_v61 = vsel %vm808_vm6, %v810_v58, %v806_v59  ;;  %vm850_vm9 = vmor %vm848_vm8, %vm849_vm7 }
0x1204   :  { %v812_v62 = vmul.f32 %v1024_v29, %v811_v61  ;;  %v845_v63 = vsub.f32 1.0, %v844_v60 }
0x1206   :  { %918 = vst [vmem:[%s1364_s7] sm:$0xff] %v812_v62  ;;  %v846_v1 = vmul.f32 %v1034_v57, %v845_v63 }
0x1208   :  { %v847_v2 = vadd.f32 %v1034_v57, %v846_v1 }
0x120a   :  { %v851_v13 = vsel %vm850_vm9, %v1034_v57, %v847_v2 }
0x120b   :  { %v856_v18 = vsel %vm853_vm10, %v855_v3, %v851_v13 }
0x120c   :  { %v857_v4 = vmul.f32 %v1026_v31, %v856_v18 }
0x120e   :  { %921 = vst [vmem:[%s1364_s7 + $0x18] sm:$0xff] %v857_v4 }
0x1224   :  { %v658_v5 = vpop.permute.xlu1 %657 }
0x1225   :  { %660 = vst.msk [vmem:[#allocation3 + $0x38] sm:$0xff] %vm42_vm0, %v658_v5 }
0x122c   :  { %v668_v6 = vld [vmem:[#allocation3 + $0x38] sm:$0xff] }
0x122d   :  { %960 = vmatmul.msk.f32.gmra.mxu3 %vm42_vm0, %v668_v6 }
0x124f   :  { %v747_v7 = vpop.xlane.xlu1 %746 }
0x1250   :  { %v760_v42 = vsub.f32 %v1309_v37, %v747_v7 }
0x1252   :  { %v770_v43 = vmul.f32 1.442695, %v760_v42 }
0x1257   :  { %v755_v9 = vpop.xlane.xlu1 %754 }
0x1258   :  { %v764_v10 = vsub.f32 %v737_v41, %v755_v9 }
0x125a   :  { %v778_v11 = vmul.f32 1.442695, %v764_v10 }
0x125c   :  { %1035 = vpow2.f32 %v778_v11 }
0x125f   :  { %v785_v15 = vpop.xlane.xlu1 %784 }
0x1260   :  { %1037 = vrcp.f32 %v785_v15  ;;  %v824_v22 = vand.u32 2147483648, %v785_v15  ;;  %v822_v25 = vand.u32 2147483647, %v785_v15  ;;  %vm818_vm0 = vweird.f32 %v785_v15 }
0x1262   :  { %v1329_v16 = vpop.eup %1035  ;;  %v825_v28 = vor.u32 1.1754944e-38, %v824_v22  ;;  %vm823_vm13 = vcmp.eq.f32.partialorder %v822_v25, 8.507059e+37 }
0x1263   :  { %794 = vadd.xlane.f32.xlu0 %v1329_v16 }
0x1266   :  { %v1038_v17 = vpop.eup %1037 }
0x1267   :  { %v814_v19 = vmul.f32 %v1038_v17, %v785_v15  ;;  %v791_v20 = vpop.xlane.xlu1 %790  ;;  %vm819_vm11 = vweird.f32 %v1038_v17 }
0x1268   :  { %1039 = vrcp.f32 %v791_v20  ;;  %vm820_vm12 = vmor %vm818_vm0, %vm819_vm11  ;;  %v869_v34 = vand.u32 2147483648, %v791_v20  ;;  %v867_v36 = vand.u32 2147483647, %v791_v20  ;;  %vm863_vm15 = vweird.f32 %v791_v20 }
0x1269   :  { %v815_v21 = vsub.f32 1.0, %v814_v19  ;;  %1041 = vpow2.f32 %v770_v43 }
0x126a   :  { %v870_v39 = vor.u32 1.1754944e-38, %v869_v34  ;;  %vm868_vm2 = vcmp.eq.f32.partialorder %v867_v36, 8.507059e+37  ;;  %1043 = vpow2.f32 %v776_v49 }
0x126b   :  { %v816_v24 = vmul.f32 %v1038_v17, %v815_v21 }
0x126d   :  { %v817_v26 = vadd.f32 %v1038_v17, %v816_v24 }
0x126e   :  { %v1040_v27 = vpop.eup %1039 }
0x126f   :  { %v821_v29 = vsel %vm820_vm12, %v1038_v17, %v817_v26  ;;  %v859_v30 = vmul.f32 %v1040_v27, %v791_v20  ;;  %vm864_vm14 = vweird.f32 %v1040_v27  ;;  %v1042_v50 = vpop.eup %1041 }
0x1270   :  { %v826_v31 = vsel %vm823_vm13, %v825_v28, %v821_v29  ;;  %vm865_vm1 = vmor %vm863_vm15, %vm864_vm14 }
0x1271   :  { %v827_v32 = vmul.f32 %v1315_v46, %v826_v31  ;;  %v860_v33 = vsub.f32 1.0, %v859_v30 }
0x1273   :  { %919 = vst [vmem:[%s1364_s7 + $0x8] sm:$0xff] %v827_v32  ;;  %v861_v35 = vmul.f32 %v1040_v27, %v860_v33 }
0x1275   :  { %v862_v38 = vadd.f32 %v1040_v27, %v861_v35 }
0x1277   :  { %v866_v40 = vsel %vm865_vm1, %v1040_v27, %v862_v38 }
0x1278   :  { %v871_v12 = vsel %vm868_vm2, %v870_v39, %v866_v40 }
0x1279   :  { %v872_v41 = vmul.f32 %v1318_v48, %v871_v12  ;;  %v1044_v48 = vpop.eup %1043 }
0x127b   :  { %922 = vst [vmem:[%s1364_s7 + $0x20] sm:$0xff] %v872_v41 }
0x12b0   :  { %v739_v44 = vpop.f32.mrf.mxu3 }
0x12b1   :  { %v740_v46 = vadd.f32 %v1295_v8, %v739_v44 }
0x12b3   :  { %756 = vmax.xlane.f32.xlu2 %v740_v46 }
0x12bb   :  { %786 = vadd.xlane.f32.xlu2 %v1042_v50 }
0x12c3   :  { %792 = vadd.xlane.f32.xlu2 %v1044_v48 }
0x12d6   :  { %v795_v51 = vpop.xlane.xlu0 %794 }
0x12d7   :  { %1045 = vrcp.f32 %v795_v51  ;;  %v899_v54 = vand.u32 2147483648, %v795_v51  ;;  %v897_v8 = vand.u32 2147483647, %v795_v51  ;;  %vm893_vm4 = vweird.f32 %v795_v51 }
0x12d9   :  { %v900_v23 = vor.u32 1.1754944e-38, %v899_v54  ;;  %vm898_vm6 = vcmp.eq.f32.partialorder %v897_v8, 8.507059e+37 }
0x12dd   :  { %v1046_v52 = vpop.eup %1045 }
0x12de   :  { %v889_v53 = vmul.f32 %v1046_v52, %v795_v51  ;;  %vm894_vm3 = vweird.f32 %v1046_v52 }
0x12df   :  { %vm895_vm5 = vmor %vm893_vm4, %vm894_vm3 }
0x12e0   :  { %v890_v37 = vsub.f32 1.0, %v889_v53 }
0x12e2   :  { %v891_v55 = vmul.f32 %v1046_v52, %v890_v37 }
0x12e4   :  { %v892_v56 = vadd.f32 %v1046_v52, %v891_v55 }
0x12e6   :  { %v896_v45 = vsel %vm895_vm5, %v1046_v52, %v892_v56 }
0x12e7   :  { %v901_v57 = vsel %vm898_vm6, %v900_v23, %v896_v45 }
0x12e8   :  { %v902_v58 = vmul.f32 %v1329_v16, %v901_v57 }
0x12ea   :  { %924 = vst [vmem:[%s1364_s7 + $0x30] sm:$0xff] %v902_v58 }
0x1326   :  { %v757_v59 = vpop.xlane.xlu2 %756 }
0x1327   :  { %v765_v60 = vsub.f32 %v740_v46, %v757_v59 }
0x1329   :  { %v780_v61 = vmul.f32 1.442695, %v765_v60 }
0x132b   :  { %1047 = vpow2.f32 %v780_v61 }
0x132e   :  { %v787_v62 = vpop.xlane.xlu2 %786 }
0x132f   :  { %1049 = vrcp.f32 %v787_v62  ;;  %v839_v3 = vand.u32 2147483648, %v787_v62  ;;  %v837_v18 = vand.u32 2147483647, %v787_v62  ;;  %vm833_vm8 = vweird.f32 %v787_v62 }
0x1331   :  { %v1048_v63 = vpop.eup %1047  ;;  %v840_v6 = vor.u32 1.1754944e-38, %v839_v3  ;;  %vm838_vm10 = vcmp.eq.f32.partialorder %v837_v18, 8.507059e+37 }
0x1332   :  { %796 = vadd.xlane.f32.xlu1 %v1048_v63 }
0x1335   :  { %v1050_v0 = vpop.eup %1049 }
0x1336   :  { %v829_v1 = vmul.f32 %v1050_v0, %v787_v62  ;;  %v793_v14 = vpop.xlane.xlu2 %792  ;;  %vm834_vm7 = vweird.f32 %v1050_v0 }
0x1337   :  { %1051 = vrcp.f32 %v793_v14  ;;  %vm835_vm9 = vmor %vm833_vm8, %vm834_vm7  ;;  %v884_v16 = vand.u32 2147483648, %v793_v14  ;;  %v882_v19 = vand.u32 2147483647, %v793_v14  ;;  %vm878_vm0 = vweird.f32 %v793_v14 }
0x1338   :  { %v830_v2 = vsub.f32 1.0, %v829_v1 }
0x1339   :  { %v885_v21 = vor.u32 1.1754944e-38, %v884_v16  ;;  %vm883_vm13 = vcmp.eq.f32.partialorder %v882_v19, 8.507059e+37 }
0x133a   :  { %v831_v13 = vmul.f32 %v1050_v0, %v830_v2 }
0x133c   :  { %v832_v4 = vadd.f32 %v1050_v0, %v831_v13 }
0x133d   :  { %v1052_v5 = vpop.eup %1051 }
0x133e   :  { %v836_v7 = vsel %vm835_vm9, %v1050_v0, %v832_v4  ;;  %v874_v9 = vmul.f32 %v1052_v5, %v793_v14  ;;  %vm879_vm11 = vweird.f32 %v1052_v5 }
0x133f   :  { %v841_v10 = vsel %vm838_vm10, %v840_v6, %v836_v7  ;;  %vm880_vm12 = vmor %vm878_vm0, %vm879_vm11 }
0x1340   :  { %v842_v11 = vmul.f32 %v1042_v50, %v841_v10  ;;  %v875_v15 = vsub.f32 1.0, %v874_v9 }
0x1342   :  { %920 = vst [vmem:[%s1364_s7 + $0x10] sm:$0xff] %v842_v11  ;;  %v876_v17 = vmul.f32 %v1052_v5, %v875_v15 }
0x1344   :  { %v877_v20 = vadd.f32 %v1052_v5, %v876_v17 }
0x1346   :  { %v881_v22 = vsel %vm880_vm12, %v1052_v5, %v877_v20 }
0x1347   :  { %v886_v24 = vsel %vm883_vm13, %v885_v21, %v881_v22 }
0x1348   :  { %v887_v25 = vmul.f32 %v1044_v48, %v886_v24 }
0x134a   :  { %923 = vst [vmem:[%s1364_s7 + $0x28] sm:$0xff] %v887_v25 }
0x13a5   :  { %v797_v26 = vpop.xlane.xlu1 %796 }
0x13a6   :  { %1053 = vrcp.f32 %v797_v26  ;;  %v914_v30 = vand.u32 2147483648, %v797_v26  ;;  %v912_v32 = vand.u32 2147483647, %v797_v26  ;;  %vm908_vm15 = vweird.f32 %v797_v26 }
0x13a8   :  { %v915_v34 = vor.u32 1.1754944e-38, %v914_v30  ;;  %vm913_vm2 = vcmp.eq.f32.partialorder %v912_v32, 8.507059e+37 }
0x13ac   :  { %v1054_v27 = vpop.eup %1053 }
0x13ad   :  { %v904_v28 = vmul.f32 %v1054_v27, %v797_v26  ;;  %vm909_vm14 = vweird.f32 %v1054_v27 }
0x13ae   :  { %vm910_vm1 = vmor %vm908_vm15, %vm909_vm14 }
0x13af   :  { %v905_v29 = vsub.f32 1.0, %v904_v28 }
0x13b1   :  { %v906_v31 = vmul.f32 %v1054_v27, %v905_v29 }
0x13b3   :  { %v907_v33 = vadd.f32 %v1054_v27, %v906_v31 }
0x13b5   :  { %v911_v35 = vsel %vm910_vm1, %v1054_v27, %v907_v33 }
0x13b6   :  { %v916_v36 = vsel %vm913_vm2, %v915_v34, %v911_v35 }
0x13b7   :  { %v917_v38 = vmul.f32 %v1048_v63, %v916_v36 }
0x13b9   :  { %925 = vst [vmem:[%s1364_s7 + $0x38] sm:$0xff] %v917_v38 }

</bundles_post_ra>
